<compile_context>
chip_gen: v7x
topology: tpu7x:2x2x1
jax: 0.10.0
libtpu: 0.0.40
codegen_flags: <defaults>
</compile_context>

<pallas_src>
import jax
import jax.numpy as jnp
from jax import lax
from jax.experimental import pallas as pl
from jax.experimental.pallas import tpu as pltpu


@jax.jit
def resnet_block(x_nchw, w1, b1, w2, b2, w3, b3, gamma, beta):
    """ResNetBlock forward. x_nchw: (N, C, H, W) f32, conv weights (Cout, Cin, 3, 3)."""
    N, C, H, W = x_nchw.shape
    HW = H * W
    L = N * HW                       # lane axis = all pixels of the whole batch
    Cp = ((C + 7) // 8) * 8          # channels padded to a full sublane tile
    eps = 1e-5
    inv_count = 1.0 / float(L)       # BN reduction size per channel (N*H*W)

    taps = [(dh, dw) for dh in (-1, 0, 1) for dw in (-1, 0, 1)]   # t = kh*3 + kw

    # ---- fused kernel: conv -> relu -> conv -> relu -> conv -> BN -> +x -> relu
    def fused_kernel(x_ref, masks_ref, w_ref, b_ref, gamma_ref, beta_ref,
                     o_ref, col_ref):
        x0 = x_ref[...]                                          # (Cp, L)

        def conv3x3(x2d, layer):
            # im2col over taps: 9 lane-rolls (XLU) + precomputed zero-pad masks,
            # staged into the (9*Cp, L) scratch, then one MXU matmul.
            for t, (dh, dw) in enumerate(taps):
                delta = dh * W + dw
                if delta == 0:
                    piece = x2d
                else:
                    piece = pltpu.roll(x2d, shift=(-delta) % L, axis=1) \
                            * masks_ref[t]                       # (1, L) mask
                col_ref[t * Cp:(t + 1) * Cp, :] = piece
            return jnp.dot(w_ref[layer], col_ref[...],
                           preferred_element_type=jnp.float32) + b_ref[layer]

        y1 = jnp.maximum(conv3x3(x0, 0), 0.0)
        y2 = jnp.maximum(conv3x3(y1, 1), 0.0)
        y3 = conv3x3(y2, 2)

        # training-mode BatchNorm (biased variance), two-pass for stability
        mean = jnp.sum(y3, axis=1, keepdims=True) * inv_count    # (Cp, 1)
        cen = y3 - mean
        var = jnp.sum(cen * cen, axis=1, keepdims=True) * inv_count
        scale = gamma_ref[...] * lax.rsqrt(var + eps)            # (Cp, 1)
        shift = beta_ref[...] - mean * scale                     # (Cp, 1)
        o_ref[...] = jnp.maximum(y3 * scale + shift + x0, 0.0)

    # ---- wrapper-side layout prep (tiny, fused under jit)
    # activations: NCHW -> (Cp, N*HW); lane index = n*HW + h*W + w
    x = jnp.transpose(x_nchw.reshape(N, C, HW), (1, 0, 2)).reshape(C, L)
    x = jnp.pad(x.astype(jnp.float32), ((0, Cp - C), (0, 0)))

    # 9 zero-padding boundary masks, hoisted out of the kernel: (9, 1, L)
    p = jnp.arange(HW, dtype=jnp.int32)
    hh, ww = p // W, p % W
    masks = jnp.stack([
        jnp.tile(((hh + dh >= 0) & (hh + dh < H) &
                  (ww + dw >= 0) & (ww + dw < W)).astype(jnp.float32), N)
        for dh, dw in taps]).reshape(9, 1, L)

    def pack_w(wt):   # torch (Cout, Cin, 3, 3) -> (Cp, 9*Cp); columns tap-major
        wp = jnp.pad(wt.astype(jnp.float32),
                     ((0, Cp - C), (0, Cp - C), (0, 0), (0, 0)))
        return jnp.transpose(wp, (0, 2, 3, 1)).reshape(Cp, 9 * Cp)

    def pad_col(v, fill=0.0):   # (C,) -> (Cp, 1)
        return jnp.pad(v.astype(jnp.float32), (0, Cp - C),
                       constant_values=fill).reshape(Cp, 1)

    w_packed = jnp.stack([pack_w(w1), pack_w(w2), pack_w(w3)])      # (3, Cp, 9*Cp)
    b_packed = jnp.stack([pad_col(b1), pad_col(b2), pad_col(b3)])   # (3, Cp, 1)

    out = pl.pallas_call(
        fused_kernel,
        out_shape=jax.ShapeDtypeStruct((Cp, L), jnp.float32),
        scratch_shapes=[pltpu.VMEM((9 * Cp, L), jnp.float32)],      # im2col buffer
    )(x, masks, w_packed, b_packed, pad_col(gamma, 1.0), pad_col(beta, 0.0))

    out = out[:C].reshape(C, N, HW)
    return jnp.transpose(out, (1, 0, 2)).reshape(N, C, H, W)


def _reference(x, w1, b1, w2, b2, w3, b3, gamma, beta):
    """Pure-JAX reference mirroring the PyTorch module (training-mode BN)."""
    def conv(z, w, b):
        out = lax.conv_general_dilated(
            z, w, window_strides=(1, 1), padding=((1, 1), (1, 1)),
            dimension_numbers=("NCHW", "OIHW", "NCHW"))
        return out + b[None, :, None, None]

    y = jnp.maximum(conv(x, w1, b1), 0.0)
    y = jnp.maximum(conv(y, w2, b2), 0.0)
    y = conv(y, w3, b3)
    mean = jnp.mean(y, axis=(0, 2, 3), keepdims=True)
    var = jnp.mean((y - mean) ** 2, axis=(0, 2, 3), keepdims=True)
    y = (y - mean) * lax.rsqrt(var + 1e-5) * gamma[None, :, None, None] \
        + beta[None, :, None, None]
    return jnp.maximum(y + x, 0.0)


if __name__ == "__main__":
    key = jax.random.PRNGKey(0)
    N, C, H, W = 2, 4, 16, 16
    keys = jax.random.split(key, 7)
    x = jax.random.normal(keys[0], (N, C, H, W), jnp.float32)

    def conv_params(kw, kb):
        w = 0.1 * jax.random.normal(kw, (C, C, 3, 3), jnp.float32)  # (Cout,Cin,kh,kw)
        b = 0.1 * jax.random.normal(kb, (C,), jnp.float32)
        return w, b

    w1, b1 = conv_params(keys[1], keys[2])
    w2, b2 = conv_params(keys[3], keys[4])
    w3, b3 = conv_params(keys[5], keys[6])
    gamma = jnp.ones((C,), jnp.float32)    # BatchNorm2d affine init
    beta = jnp.zeros((C,), jnp.float32)

    out = resnet_block(x, w1, b1, w2, b2, w3, b3, gamma, beta)
    out = jax.block_until_ready(out)
    assert out.shape == (N, C, H, W)

    ref = jax.block_until_ready(_reference(x, w1, b1, w2, b2, w3, b3, gamma, beta))
    max_err = float(jnp.max(jnp.abs(out - ref)))
    assert max_err < 1e-3, f"kernel/reference mismatch: max abs err = {max_err}"
    print("KERNEL_OK")
</pallas_src>

<mosaic_0001>
module attributes {stable_mosaic.version = 11 : i64} {
  func.func @fused_kernel(%arg0: memref<8x512xf32, #tpu.memory_space<vmem>>, %arg1: memref<9x1x512xf32, #tpu.memory_space<vmem>>, %arg2: memref<3x8x72xf32, #tpu.memory_space<vmem>>, %arg3: memref<3x8x1xf32, #tpu.memory_space<vmem>>, %arg4: memref<8x1xf32, #tpu.memory_space<vmem>>, %arg5: memref<8x1xf32, #tpu.memory_space<vmem>>, %arg6: memref<8x512xf32, #tpu.memory_space<vmem>>, %arg7: memref<72x512xf32, #tpu.memory_space<vmem>>) attributes {dimension_semantics = [], scalar_prefetch = 0 : i64, scratch_operands = 1 : i64, tpu.core_type = #tpu.core_type<tc>} {
    %c0 = arith.constant 0 : index
    %c0_0 = arith.constant 0 : index
    %0 = vector.load %arg0[%c0, %c0_0] : memref<8x512xf32, #tpu.memory_space<vmem>>, vector<8x512xf32>
    %c17_i32 = arith.constant 17 : i32
    %1 = tpu.dynamic_rotate %0 by %c17_i32 dim 1 : vector<8x512xf32>, i32 -> vector<8x512xf32>
    %c0_1 = arith.constant 0 : index
    %c0_2 = arith.constant 0 : index
    %c0_3 = arith.constant 0 : index
    %2 = vector.load %arg1[%c0_1, %c0_2, %c0_3] : memref<9x1x512xf32, #tpu.memory_space<vmem>>, vector<1x1x512xf32>
    %3 = vector.shape_cast %2 : vector<1x1x512xf32> to vector<1x512xf32>
    %4 = vector.broadcast %3 : vector<1x512xf32> to vector<8x512xf32>
    %5 = arith.mulf %1, %4 : vector<8x512xf32>
    %c0_4 = arith.constant 0 : index
    %c0_5 = arith.constant 0 : index
    %6 = vector.load %arg7[%c0_4, %c0_5] : memref<72x512xf32, #tpu.memory_space<vmem>>, vector<8x512xf32>
    tpu.vector_store %arg7[%c0_4, %c0_5], %5 {strides = array<i32>} : memref<72x512xf32, #tpu.memory_space<vmem>>, vector<8x512xf32>,
    %c16_i32 = arith.constant 16 : i32
    %7 = tpu.dynamic_rotate %0 by %c16_i32 dim 1 : vector<8x512xf32>, i32 -> vector<8x512xf32>
    %c1 = arith.constant 1 : index
    %c0_6 = arith.constant 0 : index
    %c0_7 = arith.constant 0 : index
    %8 = vector.load %arg1[%c1, %c0_6, %c0_7] : memref<9x1x512xf32, #tpu.memory_space<vmem>>, vector<1x1x512xf32>
    %9 = vector.shape_cast %8 : vector<1x1x512xf32> to vector<1x512xf32>
    %10 = vector.broadcast %9 : vector<1x512xf32> to vector<8x512xf32>
    %11 = arith.mulf %7, %10 : vector<8x512xf32>
    %c8 = arith.constant 8 : index
    %c0_8 = arith.constant 0 : index
    %12 = vector.load %arg7[%c8, %c0_8] : memref<72x512xf32, #tpu.memory_space<vmem>>, vector<8x512xf32>
    tpu.vector_store %arg7[%c8, %c0_8], %11 {strides = array<i32>} : memref<72x512xf32, #tpu.memory_space<vmem>>, vector<8x512xf32>,
    %c15_i32 = arith.constant 15 : i32
    %13 = tpu.dynamic_rotate %0 by %c15_i32 dim 1 : vector<8x512xf32>, i32 -> vector<8x512xf32>
    %c2 = arith.constant 2 : index
    %c0_9 = arith.constant 0 : index
    %c0_10 = arith.constant 0 : index
    %14 = vector.load %arg1[%c2, %c0_9, %c0_10] : memref<9x1x512xf32, #tpu.memory_space<vmem>>, vector<1x1x512xf32>
    %15 = vector.shape_cast %14 : vector<1x1x512xf32> to vector<1x512xf32>
    %16 = vector.broadcast %15 : vector<1x512xf32> to vector<8x512xf32>
    %17 = arith.mulf %13, %16 : vector<8x512xf32>
    %c16 = arith.constant 16 : index
    %c0_11 = arith.constant 0 : index
    %18 = vector.load %arg7[%c16, %c0_11] : memref<72x512xf32, #tpu.memory_space<vmem>>, vector<8x512xf32>
    tpu.vector_store %arg7[%c16, %c0_11], %17 {strides = array<i32>} : memref<72x512xf32, #tpu.memory_space<vmem>>, vector<8x512xf32>,
    %c1_i32 = arith.constant 1 : i32
    %19 = tpu.dynamic_rotate %0 by %c1_i32 dim 1 : vector<8x512xf32>, i32 -> vector<8x512xf32>
    %c3 = arith.constant 3 : index
    %c0_12 = arith.constant 0 : index
    %c0_13 = arith.constant 0 : index
    %20 = vector.load %arg1[%c3, %c0_12, %c0_13] : memref<9x1x512xf32, #tpu.memory_space<vmem>>, vector<1x1x512xf32>
    %21 = vector.shape_cast %20 : vector<1x1x512xf32> to vector<1x512xf32>
    %22 = vector.broadcast %21 : vector<1x512xf32> to vector<8x512xf32>
    %23 = arith.mulf %19, %22 : vector<8x512xf32>
    %c24 = arith.constant 24 : index
    %c0_14 = arith.constant 0 : index
    %24 = vector.load %arg7[%c24, %c0_14] : memref<72x512xf32, #tpu.memory_space<vmem>>, vector<8x512xf32>
    tpu.vector_store %arg7[%c24, %c0_14], %23 {strides = array<i32>} : memref<72x512xf32, #tpu.memory_space<vmem>>, vector<8x512xf32>,
    %c32 = arith.constant 32 : index
    %c0_15 = arith.constant 0 : index
    %25 = vector.load %arg7[%c32, %c0_15] : memref<72x512xf32, #tpu.memory_space<vmem>>, vector<8x512xf32>
    tpu.vector_store %arg7[%c32, %c0_15], %0 {strides = array<i32>} : memref<72x512xf32, #tpu.memory_space<vmem>>, vector<8x512xf32>,
    %c511_i32 = arith.constant 511 : i32
    %26 = tpu.dynamic_rotate %0 by %c511_i32 dim 1 : vector<8x512xf32>, i32 -> vector<8x512xf32>
    %c5 = arith.constant 5 : index
    %c0_16 = arith.constant 0 : index
    %c0_17 = arith.constant 0 : index
    %27 = vector.load %arg1[%c5, %c0_16, %c0_17] : memref<9x1x512xf32, #tpu.memory_space<vmem>>, vector<1x1x512xf32>
    %28 = vector.shape_cast %27 : vector<1x1x512xf32> to vector<1x512xf32>
    %29 = vector.broadcast %28 : vector<1x512xf32> to vector<8x512xf32>
    %30 = arith.mulf %26, %29 : vector<8x512xf32>
    %c40 = arith.constant 40 : index
    %c0_18 = arith.constant 0 : index
    %31 = vector.load %arg7[%c40, %c0_18] : memref<72x512xf32, #tpu.memory_space<vmem>>, vector<8x512xf32>
    tpu.vector_store %arg7[%c40, %c0_18], %30 {strides = array<i32>} : memref<72x512xf32, #tpu.memory_space<vmem>>, vector<8x512xf32>,
    %c497_i32 = arith.constant 497 : i32
    %32 = tpu.dynamic_rotate %0 by %c497_i32 dim 1 : vector<8x512xf32>, i32 -> vector<8x512xf32>
    %c6 = arith.constant 6 : index
    %c0_19 = arith.constant 0 : index
    %c0_20 = arith.constant 0 : index
    %33 = vector.load %arg1[%c6, %c0_19, %c0_20] : memref<9x1x512xf32, #tpu.memory_space<vmem>>, vector<1x1x512xf32>
    %34 = vector.shape_cast %33 : vector<1x1x512xf32> to vector<1x512xf32>
    %35 = vector.broadcast %34 : vector<1x512xf32> to vector<8x512xf32>
    %36 = arith.mulf %32, %35 : vector<8x512xf32>
    %c48 = arith.constant 48 : index
    %c0_21 = arith.constant 0 : index
    %37 = vector.load %arg7[%c48, %c0_21] : memref<72x512xf32, #tpu.memory_space<vmem>>, vector<8x512xf32>
    tpu.vector_store %arg7[%c48, %c0_21], %36 {strides = array<i32>} : memref<72x512xf32, #tpu.memory_space<vmem>>, vector<8x512xf32>,
    %c496_i32 = arith.constant 496 : i32
    %38 = tpu.dynamic_rotate %0 by %c496_i32 dim 1 : vector<8x512xf32>, i32 -> vector<8x512xf32>
    %c7 = arith.constant 7 : index
    %c0_22 = arith.constant 0 : index
    %c0_23 = arith.constant 0 : index
    %39 = vector.load %arg1[%c7, %c0_22, %c0_23] : memref<9x1x512xf32, #tpu.memory_space<vmem>>, vector<1x1x512xf32>
    %40 = vector.shape_cast %39 : vector<1x1x512xf32> to vector<1x512xf32>
    %41 = vector.broadcast %40 : vector<1x512xf32> to vector<8x512xf32>
    %42 = arith.mulf %38, %41 : vector<8x512xf32>
    %c56 = arith.constant 56 : index
    %c0_24 = arith.constant 0 : index
    %43 = vector.load %arg7[%c56, %c0_24] : memref<72x512xf32, #tpu.memory_space<vmem>>, vector<8x512xf32>
    tpu.vector_store %arg7[%c56, %c0_24], %42 {strides = array<i32>} : memref<72x512xf32, #tpu.memory_space<vmem>>, vector<8x512xf32>,
    %c495_i32 = arith.constant 495 : i32
    %44 = tpu.dynamic_rotate %0 by %c495_i32 dim 1 : vector<8x512xf32>, i32 -> vector<8x512xf32>
    %c8_25 = arith.constant 8 : index
    %c0_26 = arith.constant 0 : index
    %c0_27 = arith.constant 0 : index
    %45 = vector.load %arg1[%c8_25, %c0_26, %c0_27] : memref<9x1x512xf32, #tpu.memory_space<vmem>>, vector<1x1x512xf32>
    %46 = vector.shape_cast %45 : vector<1x1x512xf32> to vector<1x512xf32>
    %47 = vector.broadcast %46 : vector<1x512xf32> to vector<8x512xf32>
    %48 = arith.mulf %44, %47 : vector<8x512xf32>
    %c64 = arith.constant 64 : index
    %c0_28 = arith.constant 0 : index
    %49 = vector.load %arg7[%c64, %c0_28] : memref<72x512xf32, #tpu.memory_space<vmem>>, vector<8x512xf32>
    tpu.vector_store %arg7[%c64, %c0_28], %48 {strides = array<i32>} : memref<72x512xf32, #tpu.memory_space<vmem>>, vector<8x512xf32>,
    %c0_29 = arith.constant 0 : index
    %c0_30 = arith.constant 0 : index
    %c0_31 = arith.constant 0 : index
    %50 = vector.load %arg2[%c0_29, %c0_30, %c0_31] : memref<3x8x72xf32, #tpu.memory_space<vmem>>, vector<1x8x72xf32>
    %51 = vector.shape_cast %50 : vector<1x8x72xf32> to vector<8x72xf32>
    %c0_32 = arith.constant 0 : index
    %c0_33 = arith.constant 0 : index
    %52 = vector.load %arg7[%c0_32, %c0_33] : memref<72x512xf32, #tpu.memory_space<vmem>>, vector<72x512xf32>
    %cst = arith.constant dense<0.000000e+00> : vector<8x512xf32>
    %53 = tpu.matmul %51, %52, %cst {dimension_numbers = #tpu.dot_dimension_numbers<[1], [0], [0], [1], [0, 0, 1, 1], [], []>} : vector<8x72xf32>, vector<72x512xf32>, vector<8x512xf32> -> vector<8x512xf32>
    %c0_34 = arith.constant 0 : index
    %c0_35 = arith.constant 0 : index
    %c0_36 = arith.constant 0 : index
    %54 = vector.load %arg3[%c0_34, %c0_35, %c0_36] : memref<3x8x1xf32, #tpu.memory_space<vmem>>, vector<1x8x1xf32>
    %55 = vector.shape_cast %54 : vector<1x8x1xf32> to vector<8x1xf32>
    %56 = vector.broadcast %55 : vector<8x1xf32> to vector<8x512xf32>
    %57 = arith.addf %53, %56 : vector<8x512xf32>
    %cst_37 = arith.constant 0.000000e+00 : f32
    %58 = vector.broadcast %cst_37 : f32 to vector<8x512xf32>
    %59 = arith.maximumf %57, %58 : vector<8x512xf32>
    %c17_i32_38 = arith.constant 17 : i32
    %60 = tpu.dynamic_rotate %59 by %c17_i32_38 dim 1 : vector<8x512xf32>, i32 -> vector<8x512xf32>
    %c0_39 = arith.constant 0 : index
    %c0_40 = arith.constant 0 : index
    %c0_41 = arith.constant 0 : index
    %61 = vector.load %arg1[%c0_39, %c0_40, %c0_41] : memref<9x1x512xf32, #tpu.memory_space<vmem>>, vector<1x1x512xf32>
    %62 = vector.shape_cast %61 : vector<1x1x512xf32> to vector<1x512xf32>
    %63 = vector.broadcast %62 : vector<1x512xf32> to vector<8x512xf32>
    %64 = arith.mulf %60, %63 : vector<8x512xf32>
    %c0_42 = arith.constant 0 : index
    %c0_43 = arith.constant 0 : index
    %65 = vector.load %arg7[%c0_42, %c0_43] : memref<72x512xf32, #tpu.memory_space<vmem>>, vector<8x512xf32>
    tpu.vector_store %arg7[%c0_42, %c0_43], %64 {strides = array<i32>} : memref<72x512xf32, #tpu.memory_space<vmem>>, vector<8x512xf32>,
    %c16_i32_44 = arith.constant 16 : i32
    %66 = tpu.dynamic_rotate %59 by %c16_i32_44 dim 1 : vector<8x512xf32>, i32 -> vector<8x512xf32>
    %c1_45 = arith.constant 1 : index
    %c0_46 = arith.constant 0 : index
    %c0_47 = arith.constant 0 : index
    %67 = vector.load %arg1[%c1_45, %c0_46, %c0_47] : memref<9x1x512xf32, #tpu.memory_space<vmem>>, vector<1x1x512xf32>
    %68 = vector.shape_cast %67 : vector<1x1x512xf32> to vector<1x512xf32>
    %69 = vector.broadcast %68 : vector<1x512xf32> to vector<8x512xf32>
    %70 = arith.mulf %66, %69 : vector<8x512xf32>
    %c8_48 = arith.constant 8 : index
    %c0_49 = arith.constant 0 : index
    %71 = vector.load %arg7[%c8_48, %c0_49] : memref<72x512xf32, #tpu.memory_space<vmem>>, vector<8x512xf32>
    tpu.vector_store %arg7[%c8_48, %c0_49], %70 {strides = array<i32>} : memref<72x512xf32, #tpu.memory_space<vmem>>, vector<8x512xf32>,
    %c15_i32_50 = arith.constant 15 : i32
    %72 = tpu.dynamic_rotate %59 by %c15_i32_50 dim 1 : vector<8x512xf32>, i32 -> vector<8x512xf32>
    %c2_51 = arith.constant 2 : index
    %c0_52 = arith.constant 0 : index
    %c0_53 = arith.constant 0 : index
    %73 = vector.load %arg1[%c2_51, %c0_52, %c0_53] : memref<9x1x512xf32, #tpu.memory_space<vmem>>, vector<1x1x512xf32>
    %74 = vector.shape_cast %73 : vector<1x1x512xf32> to vector<1x512xf32>
    %75 = vector.broadcast %74 : vector<1x512xf32> to vector<8x512xf32>
    %76 = arith.mulf %72, %75 : vector<8x512xf32>
    %c16_54 = arith.constant 16 : index
    %c0_55 = arith.constant 0 : index
    %77 = vector.load %arg7[%c16_54, %c0_55] : memref<72x512xf32, #tpu.memory_space<vmem>>, vector<8x512xf32>
    tpu.vector_store %arg7[%c16_54, %c0_55], %76 {strides = array<i32>} : memref<72x512xf32, #tpu.memory_space<vmem>>, vector<8x512xf32>,
    %c1_i32_56 = arith.constant 1 : i32
    %78 = tpu.dynamic_rotate %59 by %c1_i32_56 dim 1 : vector<8x512xf32>, i32 -> vector<8x512xf32>
    %c3_57 = arith.constant 3 : index
    %c0_58 = arith.constant 0 : index
    %c0_59 = arith.constant 0 : index
    %79 = vector.load %arg1[%c3_57, %c0_58, %c0_59] : memref<9x1x512xf32, #tpu.memory_space<vmem>>, vector<1x1x512xf32>
    %80 = vector.shape_cast %79 : vector<1x1x512xf32> to vector<1x512xf32>
    %81 = vector.broadcast %80 : vector<1x512xf32> to vector<8x512xf32>
    %82 = arith.mulf %78, %81 : vector<8x512xf32>
    %c24_60 = arith.constant 24 : index
    %c0_61 = arith.constant 0 : index
    %83 = vector.load %arg7[%c24_60, %c0_61] : memref<72x512xf32, #tpu.memory_space<vmem>>, vector<8x512xf32>
    tpu.vector_store %arg7[%c24_60, %c0_61], %82 {strides = array<i32>} : memref<72x512xf32, #tpu.memory_space<vmem>>, vector<8x512xf32>,
    %c32_62 = arith.constant 32 : index
    %c0_63 = arith.constant 0 : index
    %84 = vector.load %arg7[%c32_62, %c0_63] : memref<72x512xf32, #tpu.memory_space<vmem>>, vector<8x512xf32>
    tpu.vector_store %arg7[%c32_62, %c0_63], %59 {strides = array<i32>} : memref<72x512xf32, #tpu.memory_space<vmem>>, vector<8x512xf32>,
    %c511_i32_64 = arith.constant 511 : i32
    %85 = tpu.dynamic_rotate %59 by %c511_i32_64 dim 1 : vector<8x512xf32>, i32 -> vector<8x512xf32>
    %c5_65 = arith.constant 5 : index
    %c0_66 = arith.constant 0 : index
    %c0_67 = arith.constant 0 : index
    %86 = vector.load %arg1[%c5_65, %c0_66, %c0_67] : memref<9x1x512xf32, #tpu.memory_space<vmem>>, vector<1x1x512xf32>
    %87 = vector.shape_cast %86 : vector<1x1x512xf32> to vector<1x512xf32>
    %88 = vector.broadcast %87 : vector<1x512xf32> to vector<8x512xf32>
    %89 = arith.mulf %85, %88 : vector<8x512xf32>
    %c40_68 = arith.constant 40 : index
    %c0_69 = arith.constant 0 : index
    %90 = vector.load %arg7[%c40_68, %c0_69] : memref<72x512xf32, #tpu.memory_space<vmem>>, vector<8x512xf32>
    tpu.vector_store %arg7[%c40_68, %c0_69], %89 {strides = array<i32>} : memref<72x512xf32, #tpu.memory_space<vmem>>, vector<8x512xf32>,
    %c497_i32_70 = arith.constant 497 : i32
    %91 = tpu.dynamic_rotate %59 by %c497_i32_70 dim 1 : vector<8x512xf32>, i32 -> vector<8x512xf32>
    %c6_71 = arith.constant 6 : index
    %c0_72 = arith.constant 0 : index
    %c0_73 = arith.constant 0 : index
    %92 = vector.load %arg1[%c6_71, %c0_72, %c0_73] : memref<9x1x512xf32, #tpu.memory_space<vmem>>, vector<1x1x512xf32>
    %93 = vector.shape_cast %92 : vector<1x1x512xf32> to vector<1x512xf32>
    %94 = vector.broadcast %93 : vector<1x512xf32> to vector<8x512xf32>
    %95 = arith.mulf %91, %94 : vector<8x512xf32>
    %c48_74 = arith.constant 48 : index
    %c0_75 = arith.constant 0 : index
    %96 = vector.load %arg7[%c48_74, %c0_75] : memref<72x512xf32, #tpu.memory_space<vmem>>, vector<8x512xf32>
    tpu.vector_store %arg7[%c48_74, %c0_75], %95 {strides = array<i32>} : memref<72x512xf32, #tpu.memory_space<vmem>>, vector<8x512xf32>,
    %c496_i32_76 = arith.constant 496 : i32
    %97 = tpu.dynamic_rotate %59 by %c496_i32_76 dim 1 : vector<8x512xf32>, i32 -> vector<8x512xf32>
    %c7_77 = arith.constant 7 : index
    %c0_78 = arith.constant 0 : index
    %c0_79 = arith.constant 0 : index
    %98 = vector.load %arg1[%c7_77, %c0_78, %c0_79] : memref<9x1x512xf32, #tpu.memory_space<vmem>>, vector<1x1x512xf32>
    %99 = vector.shape_cast %98 : vector<1x1x512xf32> to vector<1x512xf32>
    %100 = vector.broadcast %99 : vector<1x512xf32> to vector<8x512xf32>
    %101 = arith.mulf %97, %100 : vector<8x512xf32>
    %c56_80 = arith.constant 56 : index
    %c0_81 = arith.constant 0 : index
    %102 = vector.load %arg7[%c56_80, %c0_81] : memref<72x512xf32, #tpu.memory_space<vmem>>, vector<8x512xf32>
    tpu.vector_store %arg7[%c56_80, %c0_81], %101 {strides = array<i32>} : memref<72x512xf32, #tpu.memory_space<vmem>>, vector<8x512xf32>,
    %c495_i32_82 = arith.constant 495 : i32
    %103 = tpu.dynamic_rotate %59 by %c495_i32_82 dim 1 : vector<8x512xf32>, i32 -> vector<8x512xf32>
    %c8_83 = arith.constant 8 : index
    %c0_84 = arith.constant 0 : index
    %c0_85 = arith.constant 0 : index
    %104 = vector.load %arg1[%c8_83, %c0_84, %c0_85] : memref<9x1x512xf32, #tpu.memory_space<vmem>>, vector<1x1x512xf32>
    %105 = vector.shape_cast %104 : vector<1x1x512xf32> to vector<1x512xf32>
    %106 = vector.broadcast %105 : vector<1x512xf32> to vector<8x512xf32>
    %107 = arith.mulf %103, %106 : vector<8x512xf32>
    %c64_86 = arith.constant 64 : index
    %c0_87 = arith.constant 0 : index
    %108 = vector.load %arg7[%c64_86, %c0_87] : memref<72x512xf32, #tpu.memory_space<vmem>>, vector<8x512xf32>
    tpu.vector_store %arg7[%c64_86, %c0_87], %107 {strides = array<i32>} : memref<72x512xf32, #tpu.memory_space<vmem>>, vector<8x512xf32>,
    %c1_88 = arith.constant 1 : index
    %c0_89 = arith.constant 0 : index
    %c0_90 = arith.constant 0 : index
    %109 = vector.load %arg2[%c1_88, %c0_89, %c0_90] : memref<3x8x72xf32, #tpu.memory_space<vmem>>, vector<1x8x72xf32>
    %110 = vector.shape_cast %109 : vector<1x8x72xf32> to vector<8x72xf32>
    %c0_91 = arith.constant 0 : index
    %c0_92 = arith.constant 0 : index
    %111 = vector.load %arg7[%c0_91, %c0_92] : memref<72x512xf32, #tpu.memory_space<vmem>>, vector<72x512xf32>
    %cst_93 = arith.constant dense<0.000000e+00> : vector<8x512xf32>
    %112 = tpu.matmul %110, %111, %cst_93 {dimension_numbers = #tpu.dot_dimension_numbers<[1], [0], [0], [1], [0, 0, 1, 1], [], []>} : vector<8x72xf32>, vector<72x512xf32>, vector<8x512xf32> -> vector<8x512xf32>
    %c1_94 = arith.constant 1 : index
    %c0_95 = arith.constant 0 : index
    %c0_96 = arith.constant 0 : index
    %113 = vector.load %arg3[%c1_94, %c0_95, %c0_96] : memref<3x8x1xf32, #tpu.memory_space<vmem>>, vector<1x8x1xf32>
    %114 = vector.shape_cast %113 : vector<1x8x1xf32> to vector<8x1xf32>
    %115 = vector.broadcast %114 : vector<8x1xf32> to vector<8x512xf32>
    %116 = arith.addf %112, %115 : vector<8x512xf32>
    %cst_97 = arith.constant 0.000000e+00 : f32
    %117 = vector.broadcast %cst_97 : f32 to vector<8x512xf32>
    %118 = arith.maximumf %116, %117 : vector<8x512xf32>
    %c17_i32_98 = arith.constant 17 : i32
    %119 = tpu.dynamic_rotate %118 by %c17_i32_98 dim 1 : vector<8x512xf32>, i32 -> vector<8x512xf32>
    %c0_99 = arith.constant 0 : index
    %c0_100 = arith.constant 0 : index
    %c0_101 = arith.constant 0 : index
    %120 = vector.load %arg1[%c0_99, %c0_100, %c0_101] : memref<9x1x512xf32, #tpu.memory_space<vmem>>, vector<1x1x512xf32>
    %121 = vector.shape_cast %120 : vector<1x1x512xf32> to vector<1x512xf32>
    %122 = vector.broadcast %121 : vector<1x512xf32> to vector<8x512xf32>
    %123 = arith.mulf %119, %122 : vector<8x512xf32>
    %c0_102 = arith.constant 0 : index
    %c0_103 = arith.constant 0 : index
    %124 = vector.load %arg7[%c0_102, %c0_103] : memref<72x512xf32, #tpu.memory_space<vmem>>, vector<8x512xf32>
    tpu.vector_store %arg7[%c0_102, %c0_103], %123 {strides = array<i32>} : memref<72x512xf32, #tpu.memory_space<vmem>>, vector<8x512xf32>,
    %c16_i32_104 = arith.constant 16 : i32
    %125 = tpu.dynamic_rotate %118 by %c16_i32_104 dim 1 : vector<8x512xf32>, i32 -> vector<8x512xf32>
    %c1_105 = arith.constant 1 : index
    %c0_106 = arith.constant 0 : index
    %c0_107 = arith.constant 0 : index
    %126 = vector.load %arg1[%c1_105, %c0_106, %c0_107] : memref<9x1x512xf32, #tpu.memory_space<vmem>>, vector<1x1x512xf32>
    %127 = vector.shape_cast %126 : vector<1x1x512xf32> to vector<1x512xf32>
    %128 = vector.broadcast %127 : vector<1x512xf32> to vector<8x512xf32>
    %129 = arith.mulf %125, %128 : vector<8x512xf32>
    %c8_108 = arith.constant 8 : index
    %c0_109 = arith.constant 0 : index
    %130 = vector.load %arg7[%c8_108, %c0_109] : memref<72x512xf32, #tpu.memory_space<vmem>>, vector<8x512xf32>
    tpu.vector_store %arg7[%c8_108, %c0_109], %129 {strides = array<i32>} : memref<72x512xf32, #tpu.memory_space<vmem>>, vector<8x512xf32>,
    %c15_i32_110 = arith.constant 15 : i32
    %131 = tpu.dynamic_rotate %118 by %c15_i32_110 dim 1 : vector<8x512xf32>, i32 -> vector<8x512xf32>
    %c2_111 = arith.constant 2 : index
    %c0_112 = arith.constant 0 : index
    %c0_113 = arith.constant 0 : index
    %132 = vector.load %arg1[%c2_111, %c0_112, %c0_113] : memref<9x1x512xf32, #tpu.memory_space<vmem>>, vector<1x1x512xf32>
    %133 = vector.shape_cast %132 : vector<1x1x512xf32> to vector<1x512xf32>
    %134 = vector.broadcast %133 : vector<1x512xf32> to vector<8x512xf32>
    %135 = arith.mulf %131, %134 : vector<8x512xf32>
    %c16_114 = arith.constant 16 : index
    %c0_115 = arith.constant 0 : index
    %136 = vector.load %arg7[%c16_114, %c0_115] : memref<72x512xf32, #tpu.memory_space<vmem>>, vector<8x512xf32>
    tpu.vector_store %arg7[%c16_114, %c0_115], %135 {strides = array<i32>} : memref<72x512xf32, #tpu.memory_space<vmem>>, vector<8x512xf32>,
    %c1_i32_116 = arith.constant 1 : i32
    %137 = tpu.dynamic_rotate %118 by %c1_i32_116 dim 1 : vector<8x512xf32>, i32 -> vector<8x512xf32>
    %c3_117 = arith.constant 3 : index
    %c0_118 = arith.constant 0 : index
    %c0_119 = arith.constant 0 : index
    %138 = vector.load %arg1[%c3_117, %c0_118, %c0_119] : memref<9x1x512xf32, #tpu.memory_space<vmem>>, vector<1x1x512xf32>
    %139 = vector.shape_cast %138 : vector<1x1x512xf32> to vector<1x512xf32>
    %140 = vector.broadcast %139 : vector<1x512xf32> to vector<8x512xf32>
    %141 = arith.mulf %137, %140 : vector<8x512xf32>
    %c24_120 = arith.constant 24 : index
    %c0_121 = arith.constant 0 : index
    %142 = vector.load %arg7[%c24_120, %c0_121] : memref<72x512xf32, #tpu.memory_space<vmem>>, vector<8x512xf32>
    tpu.vector_store %arg7[%c24_120, %c0_121], %141 {strides = array<i32>} : memref<72x512xf32, #tpu.memory_space<vmem>>, vector<8x512xf32>,
    %c32_122 = arith.constant 32 : index
    %c0_123 = arith.constant 0 : index
    %143 = vector.load %arg7[%c32_122, %c0_123] : memref<72x512xf32, #tpu.memory_space<vmem>>, vector<8x512xf32>
    tpu.vector_store %arg7[%c32_122, %c0_123], %118 {strides = array<i32>} : memref<72x512xf32, #tpu.memory_space<vmem>>, vector<8x512xf32>,
    %c511_i32_124 = arith.constant 511 : i32
    %144 = tpu.dynamic_rotate %118 by %c511_i32_124 dim 1 : vector<8x512xf32>, i32 -> vector<8x512xf32>
    %c5_125 = arith.constant 5 : index
    %c0_126 = arith.constant 0 : index
    %c0_127 = arith.constant 0 : index
    %145 = vector.load %arg1[%c5_125, %c0_126, %c0_127] : memref<9x1x512xf32, #tpu.memory_space<vmem>>, vector<1x1x512xf32>
    %146 = vector.shape_cast %145 : vector<1x1x512xf32> to vector<1x512xf32>
    %147 = vector.broadcast %146 : vector<1x512xf32> to vector<8x512xf32>
    %148 = arith.mulf %144, %147 : vector<8x512xf32>
    %c40_128 = arith.constant 40 : index
    %c0_129 = arith.constant 0 : index
    %149 = vector.load %arg7[%c40_128, %c0_129] : memref<72x512xf32, #tpu.memory_space<vmem>>, vector<8x512xf32>
    tpu.vector_store %arg7[%c40_128, %c0_129], %148 {strides = array<i32>} : memref<72x512xf32, #tpu.memory_space<vmem>>, vector<8x512xf32>,
    %c497_i32_130 = arith.constant 497 : i32
    %150 = tpu.dynamic_rotate %118 by %c497_i32_130 dim 1 : vector<8x512xf32>, i32 -> vector<8x512xf32>
    %c6_131 = arith.constant 6 : index
    %c0_132 = arith.constant 0 : index
    %c0_133 = arith.constant 0 : index
    %151 = vector.load %arg1[%c6_131, %c0_132, %c0_133] : memref<9x1x512xf32, #tpu.memory_space<vmem>>, vector<1x1x512xf32>
    %152 = vector.shape_cast %151 : vector<1x1x512xf32> to vector<1x512xf32>
    %153 = vector.broadcast %152 : vector<1x512xf32> to vector<8x512xf32>
    %154 = arith.mulf %150, %153 : vector<8x512xf32>
    %c48_134 = arith.constant 48 : index
    %c0_135 = arith.constant 0 : index
    %155 = vector.load %arg7[%c48_134, %c0_135] : memref<72x512xf32, #tpu.memory_space<vmem>>, vector<8x512xf32>
    tpu.vector_store %arg7[%c48_134, %c0_135], %154 {strides = array<i32>} : memref<72x512xf32, #tpu.memory_space<vmem>>, vector<8x512xf32>,
    %c496_i32_136 = arith.constant 496 : i32
    %156 = tpu.dynamic_rotate %118 by %c496_i32_136 dim 1 : vector<8x512xf32>, i32 -> vector<8x512xf32>
    %c7_137 = arith.constant 7 : index
    %c0_138 = arith.constant 0 : index
    %c0_139 = arith.constant 0 : index
    %157 = vector.load %arg1[%c7_137, %c0_138, %c0_139] : memref<9x1x512xf32, #tpu.memory_space<vmem>>, vector<1x1x512xf32>
    %158 = vector.shape_cast %157 : vector<1x1x512xf32> to vector<1x512xf32>
    %159 = vector.broadcast %158 : vector<1x512xf32> to vector<8x512xf32>
    %160 = arith.mulf %156, %159 : vector<8x512xf32>
    %c56_140 = arith.constant 56 : index
    %c0_141 = arith.constant 0 : index
    %161 = vector.load %arg7[%c56_140, %c0_141] : memref<72x512xf32, #tpu.memory_space<vmem>>, vector<8x512xf32>
    tpu.vector_store %arg7[%c56_140, %c0_141], %160 {strides = array<i32>} : memref<72x512xf32, #tpu.memory_space<vmem>>, vector<8x512xf32>,
    %c495_i32_142 = arith.constant 495 : i32
    %162 = tpu.dynamic_rotate %118 by %c495_i32_142 dim 1 : vector<8x512xf32>, i32 -> vector<8x512xf32>
    %c8_143 = arith.constant 8 : index
    %c0_144 = arith.constant 0 : index
    %c0_145 = arith.constant 0 : index
    %163 = vector.load %arg1[%c8_143, %c0_144, %c0_145] : memref<9x1x512xf32, #tpu.memory_space<vmem>>, vector<1x1x512xf32>
    %164 = vector.shape_cast %163 : vector<1x1x512xf32> to vector<1x512xf32>
    %165 = vector.broadcast %164 : vector<1x512xf32> to vector<8x512xf32>
    %166 = arith.mulf %162, %165 : vector<8x512xf32>
    %c64_146 = arith.constant 64 : index
    %c0_147 = arith.constant 0 : index
    %167 = vector.load %arg7[%c64_146, %c0_147] : memref<72x512xf32, #tpu.memory_space<vmem>>, vector<8x512xf32>
    tpu.vector_store %arg7[%c64_146, %c0_147], %166 {strides = array<i32>} : memref<72x512xf32, #tpu.memory_space<vmem>>, vector<8x512xf32>,
    %c2_148 = arith.constant 2 : index
    %c0_149 = arith.constant 0 : index
    %c0_150 = arith.constant 0 : index
    %168 = vector.load %arg2[%c2_148, %c0_149, %c0_150] : memref<3x8x72xf32, #tpu.memory_space<vmem>>, vector<1x8x72xf32>
    %169 = vector.shape_cast %168 : vector<1x8x72xf32> to vector<8x72xf32>
    %c0_151 = arith.constant 0 : index
    %c0_152 = arith.constant 0 : index
    %170 = vector.load %arg7[%c0_151, %c0_152] : memref<72x512xf32, #tpu.memory_space<vmem>>, vector<72x512xf32>
    %cst_153 = arith.constant dense<0.000000e+00> : vector<8x512xf32>
    %171 = tpu.matmul %169, %170, %cst_153 {dimension_numbers = #tpu.dot_dimension_numbers<[1], [0], [0], [1], [0, 0, 1, 1], [], []>} : vector<8x72xf32>, vector<72x512xf32>, vector<8x512xf32> -> vector<8x512xf32>
    %c2_154 = arith.constant 2 : index
    %c0_155 = arith.constant 0 : index
    %c0_156 = arith.constant 0 : index
    %172 = vector.load %arg3[%c2_154, %c0_155, %c0_156] : memref<3x8x1xf32, #tpu.memory_space<vmem>>, vector<1x8x1xf32>
    %173 = vector.shape_cast %172 : vector<1x8x1xf32> to vector<8x1xf32>
    %174 = vector.broadcast %173 : vector<8x1xf32> to vector<8x512xf32>
    %175 = arith.addf %171, %174 : vector<8x512xf32>
    %cst_157 = arith.constant dense<0.000000e+00> : vector<8xf32>
    %176 = vector.multi_reduction <add>, %175, %cst_157 [1] : vector<8x512xf32> to vector<8xf32>
    %177 = vector.shape_cast %176 : vector<8xf32> to vector<8x1xf32>
    %cst_158 = arith.constant 0.001953125 : f32
    %178 = vector.broadcast %cst_158 : f32 to vector<8x1xf32>
    %179 = arith.mulf %177, %178 : vector<8x1xf32>
    %180 = vector.broadcast %179 : vector<8x1xf32> to vector<8x512xf32>
    %181 = arith.subf %175, %180 : vector<8x512xf32>
    %182 = arith.mulf %181, %181 : vector<8x512xf32>
    %cst_159 = arith.constant dense<0.000000e+00> : vector<8xf32>
    %183 = vector.multi_reduction <add>, %182, %cst_159 [1] : vector<8x512xf32> to vector<8xf32>
    %184 = vector.shape_cast %183 : vector<8xf32> to vector<8x1xf32>
    %cst_160 = arith.constant 0.001953125 : f32
    %185 = vector.broadcast %cst_160 : f32 to vector<8x1xf32>
    %186 = arith.mulf %184, %185 : vector<8x1xf32>
    %c0_161 = arith.constant 0 : index
    %c0_162 = arith.constant 0 : index
    %187 = vector.load %arg4[%c0_161, %c0_162] : memref<8x1xf32, #tpu.memory_space<vmem>>, vector<8x1xf32>
    %cst_163 = arith.constant 9.99999974E-6 : f32
    %188 = vector.broadcast %cst_163 : f32 to vector<8x1xf32>
    %189 = arith.addf %186, %188 : vector<8x1xf32>
    %190 = math.rsqrt %189 : vector<8x1xf32>
    %191 = arith.mulf %187, %190 : vector<8x1xf32>
    %c0_164 = arith.constant 0 : index
    %c0_165 = arith.constant 0 : index
    %192 = vector.load %arg5[%c0_164, %c0_165] : memref<8x1xf32, #tpu.memory_space<vmem>>, vector<8x1xf32>
    %193 = arith.mulf %179, %191 : vector<8x1xf32>
    %194 = arith.subf %192, %193 : vector<8x1xf32>
    %195 = vector.broadcast %191 : vector<8x1xf32> to vector<8x512xf32>
    %196 = arith.mulf %175, %195 : vector<8x512xf32>
    %197 = vector.broadcast %194 : vector<8x1xf32> to vector<8x512xf32>
    %198 = arith.addf %196, %197 : vector<8x512xf32>
    %199 = arith.addf %198, %0 : vector<8x512xf32>
    %cst_166 = arith.constant 0.000000e+00 : f32
    %200 = vector.broadcast %cst_166 : f32 to vector<8x512xf32>
    %201 = arith.maximumf %199, %200 : vector<8x512xf32>
    %c0_167 = arith.constant 0 : index
    %c0_168 = arith.constant 0 : index
    %202 = vector.load %arg6[%c0_167, %c0_168] : memref<8x512xf32, #tpu.memory_space<vmem>>, vector<8x512xf32>
    tpu.vector_store %arg6[%c0_167, %c0_168], %201 {strides = array<i32>} : memref<8x512xf32, #tpu.memory_space<vmem>>, vector<8x512xf32>,
    return
  }
}

</mosaic_0001>

<bundles_post_ra>
// kernel: resnet_block.1
= control target key start
LH: loop header
LB: loop body
LE: loop exit
PB: predicated region body
PF: predicated region fallthrough
CT: control target
= control target key end

     0   :  { %s1847_s23 = smov 16   ;;  %s1848_s24 = smov 17   ;;  %v1854_v4 = vmov 0.0   ;;  %v1855_v5 = vmov 0   ;;  %v35_v7 = vlaneseq  ;;  %vm427_vm8 = vcmask 588800   ;;  %s2692_s0 = inlined_call_operand.vmem [shape: f32[8,512], index: 0, kind: input, shape index: {}]   ;;  %s2693_s3 = inlined_call_operand.vmem [shape: f32[3,8,1], index: 3, kind: input, shape index: {}]   ;;  %s2694_s1 = inlined_call_operand.vmem [shape: f32[9,1,512], index: 1, kind: input, shape index: {}]   ;;  %s2695_s2 = inlined_call_operand.vmem [shape: f32[3,8,72], index: 2, kind: input, shape index: {}]   ;;  %s2696_s4 = inlined_call_operand.vmem [shape: f32[8,1], index: 4, kind: input, shape index: {}]   ;;  %s2697_s5 = inlined_call_operand.vmem [shape: f32[8,1], index: 5, kind: input, shape index: {}]   ;;  %s2698_s6 = inlined_call_operand.vmem [shape: f32[8,512], index: 6, kind: output, shape index: {}]  }
   0x1   :  { %v1895_v0 = vld [vmem:[%s2692_s0] sm:$0xff]  ;;  %v1904_v1 = vld [vmem:[%s2692_s0 + $0x8] sm:$0xff]  ;;  %v1913_v2 = vld [vmem:[%s2692_s0 + $0x18] sm:$0xff]  ;;  %s1849_s7 = smov 15   ;;  %s1850_s8 = smov 1   ;;  %495 = vmatprep.mubr.f32.mxu0 %v1854_v4  ;;  %566 = vmatprep.mubr.f32.mxu1 %v1854_v4 }
   0x2   :  { %72 = vrot.lane.b32.xlu1 %v1895_v0, %s1847_s23  ;;  %27 = vrot.lane.b32.xlu0 %v1895_v0, %s1848_s24  ;;  %v1918_v3 = vld [vmem:[%s2692_s0 + $0x10] sm:$0xff]  ;;  %s1851_s9 = smov 127   ;;  %s1852_s10 = smov 113   ;;  %v421_v6 = vld [vmem:[%s2693_s3] sm:$0xff]  ;;  %v45_v8 = vshrl.u32 %v35_v7, 7  ;;  %v1981_v9 = vand.u32 127, %v35_v7 }
   0x3   :  { %s1853_s11 = smov 112   ;;  %1839 = vset.pattern.permute.xlu0 %v1855_v5  ;;  %1840 = vset.pattern.permute.xlu1 %v1855_v5  ;;  %s1856_s12 = smov 111   ;;  %v42_v11 = vld [vmem:[%s2694_s1] sm:$0xf]  ;;  %v1702_v12 = vld [vmem:[%s2694_s1 + $0x4] sm:$0xf] }
   0x4   :  { %v1983_v10 = vsub.s32 1, %v45_v8  ;;  %vm37_vm0 = vcmp.lt.s32.totalorder %v1981_v9, 17  ;;  %vm80_vm1 = vcmp.lt.s32.totalorder %v1981_v9, 16  ;;  %v1995_v19 = vsub.s32 2, %v45_v8  ;;  %v1703_v49 = vld [vmem:[%s2694_s1 + $0x8] sm:$0xf] }
   0x5   :  { %v1997_v20 = vsub.s32 0, %v45_v8  ;;  %v2003_v23 = vsub.s32 3, %v45_v8  ;;  %v1704_v50 = vld [vmem:[%s2694_s1 + $0xc] sm:$0xf]  ;;  %vm124_vm2 = vcmp.lt.s32.totalorder %v1981_v9, 15  ;;  %vm168_vm3 = vcmp.lt.s32.totalorder %v1981_v9, 1 }
   0x6   :  { %74 = vrot.lane.b32.xlu1 %v1904_v1, %s1847_s23  ;;  %29 = vrot.lane.b32.xlu0 %v1904_v1, %s1848_s24  ;;  %v51_v15 = vrot.slane %v42_v11, %v1983_v10  ;;  %v95_v16 = vrot.slane %v1702_v12, %v1983_v10  ;;  %v55_v27 = vrot.slane %v42_v11, %v1995_v19  ;;  %vm216_vm4 = vcmp.lt.s32.totalorder %v1981_v9, 127 }
   0x7   :  { %v91_v31 = vrot.slane %v1702_v12, %v1997_v20  ;;  %v47_v32 = vrot.slane %v42_v11, %v1997_v20  ;;  %v99_v34 = vrot.slane %v1702_v12, %v1995_v19  ;;  %v59_v35 = vrot.slane %v42_v11, %v2003_v23 }
   0x8   :  { %v103_v36 = vrot.slane %v1702_v12, %v2003_v23  ;;  %v139_v56 = vrot.slane %v1703_v49, %v1983_v10  ;;  %v183_v57 = vrot.slane %v1704_v50, %v1983_v10  ;;  %v135_v5 = vrot.slane %v1703_v49, %v1997_v20 }
   0x9   :  { %v143_v12 = vrot.slane %v1703_v49, %v1995_v19  ;;  %vm260_vm5 = vcmp.lt.s32.totalorder %v1981_v9, 113  ;;  %vm304_vm6 = vcmp.lt.s32.totalorder %v1981_v9, 112  ;;  %vm348_vm7 = vcmp.lt.s32.totalorder %v1981_v9, 111 }
   0xa   :  { %33 = vrot.lane.b32.xlu1 %v1913_v2, %s1848_s24  ;;  %31 = vrot.lane.b32.xlu0 %v1918_v3, %s1848_s24 }
   0xe   :  { %78 = vrot.lane.b32.xlu1 %v1913_v2, %s1847_s23  ;;  %76 = vrot.lane.b32.xlu0 %v1918_v3, %s1847_s23 }
  0x12   :  { %118 = vrot.lane.b32.xlu1 %v1904_v1, %s1849_s7  ;;  %116 = vrot.lane.b32.xlu0 %v1895_v0, %s1849_s7 }
  0x16   :  { %162 = vrot.lane.b32.xlu1 %v1904_v1, %s1850_s8  ;;  %160 = vrot.lane.b32.xlu0 %v1895_v0, %s1850_s8 }
  0x1a   :  { %122 = vrot.lane.b32.xlu1 %v1913_v2, %s1849_s7  ;;  %120 = vrot.lane.b32.xlu0 %v1918_v3, %s1849_s7 }
  0x1e   :  { %166 = vrot.lane.b32.xlu1 %v1913_v2, %s1850_s8  ;;  %164 = vrot.lane.b32.xlu0 %v1918_v3, %s1850_s8 }
  0x22   :  { %212 = vrot.lane.b32.xlu1 %v1918_v3, %s1851_s9  ;;  %210 = vrot.lane.b32.xlu0 %v1904_v1, %s1851_s9 }
  0x26   :  { %214 = vrot.lane.b32.xlu1 %v1913_v2, %s1851_s9  ;;  %208 = vrot.lane.b32.xlu0 %v1895_v0, %s1851_s9 }
  0x2a   :  { %256 = vrot.lane.b32.xlu1 %v1918_v3, %s1852_s10  ;;  %254 = vrot.lane.b32.xlu0 %v1904_v1, %s1852_s10 }
  0x2e   :  { %300 = vrot.lane.b32.xlu1 %v1918_v3, %s1853_s11  ;;  %298 = vrot.lane.b32.xlu0 %v1904_v1, %s1853_s11 }
  0x32   :  { %258 = vrot.lane.b32.xlu1 %v1913_v2, %s1852_s10  ;;  %252 = vrot.lane.b32.xlu0 %v1895_v0, %s1852_s10 }
  0x36   :  { %302 = vrot.lane.b32.xlu1 %v1913_v2, %s1853_s11  ;;  %296 = vrot.lane.b32.xlu0 %v1895_v0, %s1853_s11 }
  0x3a   :  { %344 = vrot.lane.b32.xlu1 %v1918_v3, %s1856_s12  ;;  %342 = vrot.lane.b32.xlu0 %v1904_v1, %s1856_s12 }
  0x3e   :  { %346 = vrot.lane.b32.xlu1 %v1913_v2, %s1856_s12  ;;  %340 = vrot.lane.b32.xlu0 %v1895_v0, %s1856_s12 }
  0x42   :  { %424 = vperm.xlu0 %1839, %v421_v6  }
  0x74   :  { %v73_v13 = vpop.permute.xlu1 %72  ;;  %v28_v14 = vpop.permute.xlu0 %27 }
  0x78   :  { %v75_v17 = vpop.permute.xlu1 %74  ;;  %v30_v18 = vpop.permute.xlu0 %29 }
  0x79   :  { %v40_v21 = vsel %vm37_vm0, %v28_v14, %v30_v18  ;;  %v83_v22 = vsel %vm80_vm1, %v73_v13, %v75_v17 }
  0x7a   :  { %v65_v24 = vmul.f32 %v51_v15, %v40_v21  ;;  %v109_v25 = vmul.f32 %v95_v16, %v83_v22  ;;  %v179_v16 = vrot.slane %v1704_v50, %v1997_v20 }
  0x7c   :  { %v34_v26 = vpop.permute.xlu1 %33  ;;  %v32_v28 = vpop.permute.xlu0 %31  ;;  %v1733_v29 = vpack.c.bf16 %v109_v25, %v65_v24 }
  0x7d   :  { %v39_v30 = vsel %vm37_vm0, %v30_v18, %v32_v28  ;;  %v41_v33 = vsel %vm37_vm0, %v34_v26, %v28_v14  ;;  %v38_v37 = vsel %vm37_vm0, %v32_v28, %v34_v26  ;;  %v1705_v14 = vld [vmem:[%s2694_s1 + $0x14] sm:$0xf]  ;;  %v191_v18 = vrot.slane %v1704_v50, %v2003_v23 }
  0x7e   :  { %1734 = vmatprep.subr.bf16.mxu0 %v1733_v29  ;;  %v66_v38 = vmul.f32 %v55_v27, %v39_v30  ;;  %v64_v44 = vmul.f32 %v47_v32, %v41_v33  ;;  %v67_v47 = vmul.f32 %v59_v35, %v38_v37  ;;  %v231_v26 = vrot.slane %v1705_v14, %v1983_v10 }
  0x80   :  { %v79_v39 = vpop.permute.xlu1 %78  ;;  %v77_v40 = vpop.permute.xlu0 %76 }
  0x81   :  { %v84_v41 = vsel %vm80_vm1, %v79_v39, %v73_v13  ;;  %v81_v42 = vsel %vm80_vm1, %v77_v40, %v79_v39  ;;  %v82_v43 = vsel %vm80_vm1, %v75_v17, %v77_v40  ;;  %v147_v13 = vrot.slane %v1703_v49, %v2003_v23 }
  0x82   :  { %v108_v45 = vmul.f32 %v91_v31, %v84_v41  ;;  %v110_v46 = vmul.f32 %v99_v34, %v82_v43  ;;  %v111_v48 = vmul.f32 %v103_v36, %v81_v42  ;;  %v187_v17 = vrot.slane %v1704_v50, %v1995_v19 }
  0x83   :  { %v235_v41 = vrot.slane %v1705_v14, %v1995_v19  ;;  %v227_v43 = vrot.slane %v1705_v14, %v1997_v20 }
  0x84   :  { %v119_v51 = vpop.permute.xlu1 %118  ;;  %v117_v52 = vpop.permute.xlu0 %116  ;;  %v1735_v53 = vpack.c.bf16 %v108_v45, %v64_v44  ;;  %v1749_v54 = vpack.c.bf16 %v111_v48, %v67_v47  ;;  %v1751_v55 = vpack.c.bf16 %v110_v46, %v66_v38  ;;  %v239_v44 = vrot.slane %v1705_v14, %v2003_v23 }
  0x85   :  { %v127_v58 = vsel %vm124_vm2, %v117_v52, %v119_v51 }
  0x86   :  { %1736 = vmatpush1.bf16.msra.mxu0 %v1735_v53  ;;  %1750 = vmatprep.subr.bf16.mxu1 %v1749_v54  ;;  %v153_v62 = vmul.f32 %v139_v56, %v127_v58  ;;  %v1706_v54 = vld [vmem:[%s2694_s1 + $0x18] sm:$0xf] }
  0x87   :  { %1752 = vmatpush1.bf16.msra.mxu1 %v1751_v55  ;;  %v283_v14 = vrot.slane %v1706_v54, %v2003_v23 }
  0x88   :  { %v163_v59 = vpop.permute.xlu1 %162  ;;  %v161_v60 = vpop.permute.xlu0 %160 }
  0x89   :  { %v171_v61 = vsel %vm168_vm3, %v161_v60, %v163_v59 }
  0x8a   :  { %v197_v63 = vmul.f32 %v183_v57, %v171_v61 }
  0x8c   :  { %v123_v6 = vpop.permute.xlu1 %122  ;;  %v121_v7 = vpop.permute.xlu0 %120  ;;  %v1737_v8 = vpack.c.bf16 %v197_v63, %v153_v62 }
  0x8d   :  { %v128_v11 = vsel %vm124_vm2, %v123_v6, %v117_v52  ;;  %v126_v15 = vsel %vm124_vm2, %v119_v51, %v121_v7  ;;  %v125_v21 = vsel %vm124_vm2, %v121_v7, %v123_v6 }
  0x8e   :  { %1738 = vmatprep.subr.bf16.mxu0 %v1737_v8  ;;  %v152_v22 = vmul.f32 %v135_v5, %v128_v11  ;;  %v154_v27 = vmul.f32 %v143_v12, %v126_v15  ;;  %v155_v31 = vmul.f32 %v147_v13, %v125_v21  ;;  %v271_v13 = vrot.slane %v1706_v54, %v1997_v20  ;;  %v1708_v15 = vld [vmem:[%s2694_s1 + $0x20] sm:$0xf] }
  0x90   :  { %v167_v24 = vpop.permute.xlu1 %166  ;;  %v165_v25 = vpop.permute.xlu0 %164 }
  0x91   :  { %v172_v28 = vsel %vm168_vm3, %v167_v24, %v161_v60  ;;  %v169_v29 = vsel %vm168_vm3, %v165_v25, %v167_v24  ;;  %v170_v30 = vsel %vm168_vm3, %v163_v59, %v165_v25  ;;  %v275_v60 = vrot.slane %v1706_v54, %v1983_v10 }
  0x92   :  { %v196_v32 = vmul.f32 %v179_v16, %v172_v28  ;;  %v198_v33 = vmul.f32 %v187_v17, %v170_v30  ;;  %v199_v34 = vmul.f32 %v191_v18, %v169_v29 }
  0x94   :  { %v213_v35 = vpop.permute.xlu1 %212  ;;  %v211_v36 = vpop.permute.xlu0 %210  ;;  %v1739_v37 = vpack.c.bf16 %v196_v32, %v152_v22  ;;  %v1753_v38 = vpack.c.bf16 %v199_v34, %v155_v31  ;;  %v1755_v39 = vpack.c.bf16 %v198_v33, %v154_v27  ;;  %v363_v27 = vrot.slane %v1708_v15, %v1983_v10 }
  0x95   :  { %v218_v40 = vsel %vm216_vm4, %v211_v36, %v213_v35 }
  0x96   :  { %v245_v42 = vmul.f32 %v231_v26, %v218_v40  ;;  %1740 = vmatpush1.bf16.msra.mxu0 %v1739_v37  ;;  %1754 = vmatprep.subr.bf16.mxu1 %v1753_v38 }
  0x97   :  { %1756 = vmatpush1.bf16.msra.mxu1 %v1755_v39 }
  0x98   :  { %v215_v45 = vpop.permute.xlu1 %214  ;;  %v209_v46 = vpop.permute.xlu0 %208  ;;  %v1741_v47 = vpack.c.bf16 %v245_v42, %v1904_v1  ;;  %v1707_v1 = vld [vmem:[%s2694_s1 + $0x1c] sm:$0xf]  ;;  %v367_v42 = vrot.slane %v1708_v15, %v1995_v19 }
  0x99   :  { %v217_v48 = vsel %vm216_vm4, %v213_v35, %v215_v45  ;;  %v219_v49 = vsel %vm216_vm4, %v209_v46, %v211_v36  ;;  %v220_v50 = vsel %vm216_vm4, %v215_v45, %v209_v46  ;;  %v319_v61 = vrot.slane %v1707_v1, %v1983_v10 }
  0x9a   :  { %v246_v51 = vmul.f32 %v235_v41, %v217_v48  ;;  %v244_v52 = vmul.f32 %v227_v43, %v219_v49  ;;  %v247_v53 = vmul.f32 %v239_v44, %v220_v50  ;;  %1742 = vmatprep.subr.bf16.mxu0 %v1741_v47  ;;  %v323_v17 = vrot.slane %v1707_v1, %v1995_v19 }
  0x9b   :  { %v315_v18 = vrot.slane %v1707_v1, %v1997_v20  ;;  %v327_v21 = vrot.slane %v1707_v1, %v2003_v23  ;;  %v359_v44 = vrot.slane %v1708_v15, %v1997_v20  ;;  %v371_v45 = vrot.slane %v1708_v15, %v2003_v23 }
  0x9c   :  { %v257_v55 = vpop.permute.xlu1 %256  ;;  %v255_v56 = vpop.permute.xlu0 %254  ;;  %v1743_v57 = vpack.c.bf16 %v244_v52, %v1895_v0  ;;  %v1757_v58 = vpack.c.bf16 %v247_v53, %v1913_v2  ;;  %v1759_v59 = vpack.c.bf16 %v246_v51, %v1918_v3  ;;  %v279_v3 = vrot.slane %v1706_v54, %v1995_v19  ;;  %v384_v54 = vld [vmem:[%s2695_s2] sm:$0xff] }
  0x9d   :  { %v262_v62 = vsel %vm260_vm5, %v255_v56, %v257_v55 }
  0x9e   :  { %1744 = vmatpush1.bf16.msra.mxu0 %v1743_v57  ;;  %1758 = vmatprep.subr.bf16.mxu1 %v1757_v58  ;;  %v289_v2 = vmul.f32 %v275_v60, %v262_v62 }
  0x9f   :  { %1760 = vmatpush1.bf16.msra.mxu1 %v1759_v59 }
  0xa0   :  { %v301_v63 = vpop.permute.xlu1 %300  ;;  %v299_v5 = vpop.permute.xlu0 %298 }
  0xa1   :  { %v306_v0 = vsel %vm304_vm6, %v299_v5, %v301_v63 }
  0xa2   :  { %v333_v6 = vmul.f32 %v319_v61, %v306_v0 }
  0xa4   :  { %v259_v7 = vpop.permute.xlu1 %258  ;;  %v253_v8 = vpop.permute.xlu0 %252  ;;  %v1745_v11 = vpack.c.bf16 %v333_v6, %v289_v2  ;;  %v1719_v6 = vld [vmem:[%s2693_s3 + $0x8] sm:$0xff] }
  0xa5   :  { %v261_v12 = vsel %vm260_vm5, %v257_v55, %v259_v7  ;;  %v263_v16 = vsel %vm260_vm5, %v253_v8, %v255_v56  ;;  %v264_v22 = vsel %vm260_vm5, %v259_v7, %v253_v8 }
  0xa6   :  { %1746 = vmatprep.subr.bf16.mxu0 %v1745_v11  ;;  %v290_v24 = vmul.f32 %v279_v3, %v261_v12  ;;  %v288_v28 = vmul.f32 %v271_v13, %v263_v16  ;;  %v291_v32 = vmul.f32 %v283_v14, %v264_v22  ;;  %v589_v16 = vld [vmem:[%s2694_s1] sm:$0xf] }
  0xa7   :  { %v598_v22 = vrot.slane %v589_v16, %v1983_v10 }
  0xa8   :  { %v303_v25 = vpop.permute.xlu1 %302  ;;  %v297_v26 = vpop.permute.xlu0 %296 }
  0xa9   :  { %v305_v29 = vsel %vm304_vm6, %v301_v63, %v303_v25  ;;  %v307_v30 = vsel %vm304_vm6, %v297_v26, %v299_v5  ;;  %v308_v31 = vsel %vm304_vm6, %v303_v25, %v297_v26 }
  0xaa   :  { %v334_v33 = vmul.f32 %v323_v17, %v305_v29  ;;  %v332_v34 = vmul.f32 %v315_v18, %v307_v30  ;;  %v335_v35 = vmul.f32 %v327_v21, %v308_v31  ;;  %v1711_v17 = vld [vmem:[%s2694_s1 + $0x4] sm:$0xf] }
  0xac   :  { %v345_v36 = vpop.permute.xlu1 %344  ;;  %v343_v37 = vpop.permute.xlu0 %342  ;;  %v1747_v38 = vpack.c.bf16 %v332_v34, %v288_v28  ;;  %v1761_v39 = vpack.c.bf16 %v335_v35, %v291_v32  ;;  %v1763_v40 = vpack.c.bf16 %v334_v33, %v290_v24  ;;  %v640_v24 = vrot.slane %v1711_v17, %v1983_v10 }
  0xad   :  { %v350_v41 = vsel %vm348_vm7, %v343_v37, %v345_v36  ;;  %v644_v34 = vrot.slane %v1711_v17, %v1995_v19  ;;  %v594_v35 = vrot.slane %v589_v16, %v1997_v20 }
  0xae   :  { %v377_v43 = vmul.f32 %v363_v27, %v350_v41  ;;  %1748 = vmatpush1.bf16.msra.mxu0 %v1747_v38  ;;  %1762 = vmatprep.subr.bf16.mxu1 %v1761_v39  ;;  %v636_v38 = vrot.slane %v1711_v17, %v1997_v20  ;;  %v648_v39 = vrot.slane %v1711_v17, %v2003_v23 }
  0xaf   :  { %1764 = vmatpush1.bf16.msra.mxu1 %v1763_v40  ;;  %v602_v40 = vrot.slane %v589_v16, %v1995_v19 }
  0xb0   :  { %v347_v46 = vpop.permute.xlu1 %346  ;;  %447 = vmatprep.subr.mxu0 %v377_v43  ;;  %v341_v47 = vpop.permute.xlu0 %340 }
  0xb1   :  { %v349_v48 = vsel %vm348_vm7, %v345_v36, %v347_v46  ;;  %v351_v49 = vsel %vm348_vm7, %v341_v47, %v343_v37  ;;  %v352_v50 = vsel %vm348_vm7, %v347_v46, %v341_v47  ;;  %v606_v37 = vrot.slane %v589_v16, %v2003_v23 }
  0xb2   :  { %v378_v51 = vmul.f32 %v367_v42, %v349_v48  ;;  %v376_v52 = vmul.f32 %v359_v44, %v351_v49  ;;  %v379_v53 = vmul.f32 %v371_v45, %v352_v50 }
  0xb4   :  { %448 = vmatpush1.msra.mxu0 %v376_v52  ;;  %518 = vmatprep.subr.mxu1 %v379_v53 }
  0xb5   :  { %1709 = vmatmul.mubr.msk.f32.vlgmr.msra.gmra.mrb[0].mxu0 %vm427_vm8, %v384_v54  ;;  %519 = vmatpush1.msra.mxu1 %v378_v51 }
  0xb6   :  { %1710 = vmatmul.mubr.msk.f32.vlgmr.msra.gmra.mrb[0].mxu1 %vm427_vm8, %v384_v54  ;;  %1029 = vmatprep.mubr.f32.mxu0 %v1854_v4  ;;  %v1712_v54 = vld [vmem:[%s2694_s1 + $0x8] sm:$0xf] }
  0xb7   :  { %1100 = vmatprep.mubr.f32.mxu1 %v1854_v4  ;;  %v686_v17 = vrot.slane %v1712_v54, %v1995_v19 }
  0xc1   :  { %v425_v1 = vpop.permute.xlu0 %424 }
 0x188   :  { %v497_v55 = vpop.f32.mrb[0].mxu0 }
 0x189   :  { %v498_v56 = vadd.f32 %v497_v55, %v425_v1  ;;  %v499_v57 = vpop.f32.mrb[1].mxu0  ;;  %v568_v58 = vpop.f32.mrb[0].mxu1 }
 0x18a   :  { %v570_v59 = vpop.f32.mrb[1].mxu1  ;;  %v569_v61 = vadd.f32 %v568_v58, %v425_v1  ;;  %v500_v63 = vadd.f32 %v499_v57, %v425_v1 }
 0x18b   :  { %v2130_v60 = vmax.f32 %v498_v56, 0.0  ;;  %v571_v0 = vadd.f32 %v570_v59, %v425_v1  ;;  %v1713_v1 = vld [vmem:[%s2694_s1 + $0xc] sm:$0xf] }
 0x18c   :  { %v2136_v62 = vmax.f32 %v569_v61, 0.0  ;;  %v2150_v5 = vmax.f32 %v500_v63, 0.0  ;;  %v682_v61 = vrot.slane %v1712_v54, %v1983_v10  ;;  %v724_v63 = vrot.slane %v1713_v1, %v1983_v10 }
 0x18d   :  { %619 = vrot.lane.b32.xlu0 %v2130_v60, %s1847_s23  ;;  %577 = vrot.lane.b32.xlu1 %v2130_v60, %s1848_s24  ;;  %v2160_v2 = vmax.f32 %v571_v0, 0.0 }
 0x191   :  { %581 = vrot.lane.b32.xlu0 %v2136_v62, %s1848_s24  ;;  %753 = vrot.lane.b32.xlu1 %v2136_v62, %s1851_s9 }
 0x195   :  { %623 = vrot.lane.b32.xlu0 %v2136_v62, %s1847_s23  ;;  %795 = vrot.lane.b32.xlu1 %v2136_v62, %s1852_s10 }
 0x199   :  { %661 = vrot.lane.b32.xlu0 %v2130_v60, %s1849_s7  ;;  %837 = vrot.lane.b32.xlu1 %v2136_v62, %s1853_s11 }
 0x19d   :  { %703 = vrot.lane.b32.xlu0 %v2130_v60, %s1850_s8  ;;  %579 = vrot.lane.b32.xlu1 %v2150_v5, %s1848_s24 }
 0x1a1   :  { %665 = vrot.lane.b32.xlu0 %v2136_v62, %s1849_s7  ;;  %621 = vrot.lane.b32.xlu1 %v2150_v5, %s1847_s23 }
 0x1a5   :  { %707 = vrot.lane.b32.xlu0 %v2136_v62, %s1850_s8  ;;  %583 = vrot.lane.b32.xlu1 %v2160_v2, %s1848_s24 }
 0x1a9   :  { %749 = vrot.lane.b32.xlu0 %v2130_v60, %s1851_s9  ;;  %625 = vrot.lane.b32.xlu1 %v2160_v2, %s1847_s23 }
 0x1ad   :  { %791 = vrot.lane.b32.xlu0 %v2130_v60, %s1852_s10  ;;  %663 = vrot.lane.b32.xlu1 %v2150_v5, %s1849_s7 }
 0x1b1   :  { %833 = vrot.lane.b32.xlu0 %v2130_v60, %s1853_s11  ;;  %705 = vrot.lane.b32.xlu1 %v2150_v5, %s1850_s8 }
 0x1b5   :  { %751 = vrot.lane.b32.xlu0 %v2150_v5, %s1851_s9  ;;  %667 = vrot.lane.b32.xlu1 %v2160_v2, %s1849_s7 }
 0x1b9   :  { %793 = vrot.lane.b32.xlu0 %v2150_v5, %s1852_s10  ;;  %709 = vrot.lane.b32.xlu1 %v2160_v2, %s1850_s8 }
 0x1bd   :  { %835 = vrot.lane.b32.xlu0 %v2150_v5, %s1853_s11  ;;  %755 = vrot.lane.b32.xlu1 %v2160_v2, %s1851_s9 }
 0x1c1   :  { %877 = vrot.lane.b32.xlu0 %v2150_v5, %s1856_s12  ;;  %797 = vrot.lane.b32.xlu1 %v2160_v2, %s1852_s10 }
 0x1c5   :  { %875 = vrot.lane.b32.xlu0 %v2130_v60, %s1856_s12  ;;  %839 = vrot.lane.b32.xlu1 %v2160_v2, %s1853_s11 }
 0x1c9   :  { %959 = vperm.xlu0 %1839, %v1719_v6   ;;  %879 = vrot.lane.b32.xlu1 %v2136_v62, %s1856_s12 }
 0x1cd   :  { %881 = vrot.lane.b32.xlu1 %v2160_v2, %s1856_s12 }
 0x1ff   :  { %v620_v3 = vpop.permute.xlu0 %619  ;;  %v578_v7 = vpop.permute.xlu1 %577 }
 0x203   :  { %v582_v8 = vpop.permute.xlu0 %581  ;;  %v2205_v11 = vpop.permute.xlu1 %753 }
 0x207   :  { %v624_v12 = vpop.permute.xlu0 %623  ;;  %v2207_v13 = vpop.permute.xlu1 %795 }
 0x20b   :  { %v2209_v14 = vpop.permute.xlu0 %661  ;;  %v2211_v15 = vpop.permute.xlu1 %837 }
 0x20f   :  { %v2219_v18 = vpop.permute.xlu0 %703  ;;  %v580_v21 = vpop.permute.xlu1 %579 }
 0x210   :  { %v587_v25 = vsel %vm37_vm0, %v578_v7, %v580_v21  ;;  %v586_v43 = vsel %vm37_vm0, %v580_v21, %v582_v8  ;;  %v728_v21 = vrot.slane %v1713_v1, %v1995_v19 }
 0x211   :  { %v612_v29 = vmul.f32 %v598_v22, %v587_v25  ;;  %v613_v53 = vmul.f32 %v602_v40, %v586_v43 }
 0x213   :  { %v2225_v26 = vpop.permute.xlu0 %665  ;;  %v622_v27 = vpop.permute.xlu1 %621 }
 0x214   :  { %v629_v28 = vsel %vm80_vm1, %v620_v3, %v622_v27  ;;  %v628_v36 = vsel %vm80_vm1, %v622_v27, %v624_v12 }
 0x215   :  { %v654_v30 = vmul.f32 %v640_v24, %v629_v28  ;;  %v655_v46 = vmul.f32 %v644_v34, %v628_v36  ;;  %v2278_v28 = vld [vmem:[%s2694_s1 + $0x18] sm:$0xf]  ;;  %v678_v34 = vrot.slane %v1712_v54, %v1997_v20  ;;  %v690_v36 = vrot.slane %v1712_v54, %v2003_v23 }
 0x217   :  { %v2229_v31 = vpop.permute.xlu0 %707  ;;  %v584_v32 = vpop.permute.xlu1 %583  ;;  %v1765_v33 = vpack.c.bf16 %v654_v30, %v612_v29  ;;  %v1783_v59 = vpack.c.bf16 %v655_v46, %v613_v53  ;;  %v2283_v29 = vld [vmem:[%s2694_s1 + $0x1c] sm:$0xf] }
 0x218   :  { %v585_v41 = vsel %vm37_vm0, %v582_v8, %v584_v32  ;;  %v588_v42 = vsel %vm37_vm0, %v584_v32, %v578_v7  ;;  %v1714_v8 = vld [vmem:[%s2694_s1 + $0x14] sm:$0xf] }
 0x219   :  { %1766 = vmatprep.subr.bf16.mxu0 %v1765_v33  ;;  %v611_v49 = vmul.f32 %v594_v35, %v588_v42  ;;  %v614_v50 = vmul.f32 %v606_v37, %v585_v41  ;;  %v770_v22 = vrot.slane %v1714_v8, %v1983_v10  ;;  %v766_v32 = vrot.slane %v1714_v8, %v1997_v20 }
 0x21a   :  { %v720_v37 = vrot.slane %v1713_v1, %v1997_v20  ;;  %v812_v41 = vrot.slane %v2278_v28, %v1983_v10  ;;  %v854_v42 = vrot.slane %v2283_v29, %v1983_v10 }
 0x21b   :  { %v2245_v44 = vpop.permute.xlu0 %749  ;;  %v626_v45 = vpop.permute.xlu1 %625 }
 0x21c   :  { %v627_v47 = vsel %vm80_vm1, %v624_v12, %v626_v45  ;;  %v630_v48 = vsel %vm80_vm1, %v626_v45, %v620_v3 }
 0x21d   :  { %v653_v51 = vmul.f32 %v636_v38, %v630_v48  ;;  %v656_v52 = vmul.f32 %v648_v39, %v627_v47  ;;  %v732_v38 = vrot.slane %v1713_v1, %v2003_v23 }
 0x21f   :  { %v1767_v55 = vpack.c.bf16 %v653_v51, %v611_v49  ;;  %v2257_v56 = vpop.permute.xlu0 %791  ;;  %v664_v57 = vpop.permute.xlu1 %663  ;;  %v1781_v58 = vpack.c.bf16 %v656_v52, %v614_v50  ;;  %v778_v51 = vrot.slane %v1714_v8, %v2003_v23 }
 0x220   :  { %v671_v0 = vsel %vm124_vm2, %v2209_v14, %v664_v57  ;;  %v670_v35 = vsel %vm124_vm2, %v664_v57, %v2225_v26  ;;  %v808_v57 = vrot.slane %v2278_v28, %v1997_v20 }
 0x221   :  { %1768 = vmatpush1.bf16.msra.mxu0 %v1767_v55  ;;  %1782 = vmatprep.subr.bf16.mxu1 %v1781_v58  ;;  %v696_v12 = vmul.f32 %v682_v61, %v671_v0  ;;  %v697_v49 = vmul.f32 %v686_v17, %v670_v35 }
 0x222   :  { %1784 = vmatpush1.bf16.msra.mxu1 %v1783_v59 }
 0x223   :  { %v2264_v6 = vpop.permute.xlu0 %833  ;;  %v706_v3 = vpop.permute.xlu1 %705 }
 0x224   :  { %v713_v7 = vsel %vm168_vm3, %v2219_v18, %v706_v3  ;;  %v712_v30 = vsel %vm168_vm3, %v706_v3, %v2229_v31 }
 0x225   :  { %v738_v16 = vmul.f32 %v724_v63, %v713_v7  ;;  %v739_v43 = vmul.f32 %v728_v21, %v712_v30 }
 0x227   :  { %v752_v24 = vpop.permute.xlu0 %751  ;;  %v668_v25 = vpop.permute.xlu1 %667  ;;  %v1769_v27 = vpack.c.bf16 %v738_v16, %v696_v12  ;;  %v1787_v59 = vpack.c.bf16 %v739_v43, %v697_v49 }
 0x228   :  { %v758_v33 = vsel %vm216_vm4, %v752_v24, %v2205_v11  ;;  %v669_v39 = vsel %vm124_vm2, %v2225_v26, %v668_v25  ;;  %v672_v40 = vsel %vm124_vm2, %v668_v25, %v2209_v14  ;;  %v759_v45 = vsel %vm216_vm4, %v2245_v44, %v752_v24 }
 0x229   :  { %1770 = vmatprep.subr.bf16.mxu0 %v1769_v27  ;;  %v784_v46 = vmul.f32 %v770_v22, %v758_v33  ;;  %v774_v26 = vrot.slane %v1714_v8, %v1995_v19  ;;  %v695_v52 = vmul.f32 %v678_v34, %v672_v40  ;;  %v698_v53 = vmul.f32 %v690_v36, %v669_v39 }
 0x22a   :  { %v783_v55 = vmul.f32 %v766_v32, %v759_v45  ;;  %v816_v34 = vrot.slane %v2278_v28, %v1995_v19  ;;  %v858_v36 = vrot.slane %v2283_v29, %v1995_v19 }
 0x22b   :  { %v794_v47 = vpop.permute.xlu0 %793  ;;  %v710_v48 = vpop.permute.xlu1 %709  ;;  %v1773_v3 = vpack.c.bf16 %v784_v46, %v2150_v5 }
 0x22c   :  { %v711_v14 = vsel %vm168_vm3, %v2229_v31, %v710_v48  ;;  %v714_v50 = vsel %vm168_vm3, %v710_v48, %v2219_v18  ;;  %v800_v58 = vsel %vm260_vm5, %v794_v47, %v2207_v13  ;;  %v850_v31 = vrot.slane %v2283_v29, %v1997_v20 }
 0x22d   :  { %v737_v54 = vmul.f32 %v720_v37, %v714_v50  ;;  %v740_v1 = vmul.f32 %v732_v38, %v711_v14  ;;  %v826_v17 = vmul.f32 %v812_v41, %v800_v58  ;;  %v1775_v24 = vpack.c.bf16 %v783_v55, %v2130_v60 }
 0x22e   :  { %v801_v25 = vsel %vm260_vm5, %v2257_v56, %v794_v47  ;;  %v820_v60 = vrot.slane %v2278_v28, %v2003_v23  ;;  %v1717_v28 = vld [vmem:[%s2694_s1 + $0x20] sm:$0xf] }
 0x22f   :  { %v1771_v61 = vpack.c.bf16 %v737_v54, %v695_v52  ;;  %v836_v18 = vpop.permute.xlu0 %835  ;;  %v756_v63 = vpop.permute.xlu1 %755  ;;  %v1785_v0 = vpack.c.bf16 %v740_v1, %v698_v53  ;;  %v825_v35 = vmul.f32 %v808_v57, %v801_v25  ;;  %v896_v41 = vrot.slane %v1717_v28, %v1983_v10  ;;  %v1718_v52 = vld [vmem:[%s2695_s2 + $0x8] sm:$0xff] }
 0x230   :  { %v842_v7 = vsel %vm304_vm6, %v836_v18, %v2211_v15  ;;  %v843_v8 = vsel %vm304_vm6, %v2264_v6, %v836_v18  ;;  %v757_v12 = vsel %vm216_vm4, %v2205_v11, %v756_v63  ;;  %v760_v16 = vsel %vm216_vm4, %v756_v63, %v2245_v44 }
 0x231   :  { %v868_v21 = vmul.f32 %v854_v42, %v842_v7  ;;  %v785_v22 = vmul.f32 %v774_v26, %v757_v12  ;;  %v786_v5 = vmul.f32 %v778_v51, %v760_v16  ;;  %1772 = vmatpush1.bf16.msra.mxu0 %v1771_v61  ;;  %1786 = vmatprep.subr.bf16.mxu1 %v1785_v0 }
 0x232   :  { %1774 = vmatprep.subr.bf16.mxu0 %v1773_v3  ;;  %v867_v27 = vmul.f32 %v850_v31, %v843_v8  ;;  %1788 = vmatpush1.bf16.msra.mxu1 %v1787_v59  ;;  %v892_v46 = vrot.slane %v1717_v28, %v1997_v20  ;;  %v904_v50 = vrot.slane %v1717_v28, %v2003_v23 }
 0x233   :  { %v1791_v11 = vpack.c.bf16 %v785_v22, %v2136_v62  ;;  %v878_v30 = vpop.permute.xlu0 %877  ;;  %v798_v32 = vpop.permute.xlu1 %797  ;;  %v1789_v44 = vpack.c.bf16 %v786_v5, %v2160_v2  ;;  %v1777_v33 = vpack.c.bf16 %v868_v21, %v826_v17  ;;  %v862_v62 = vrot.slane %v2283_v29, %v2003_v23  ;;  %v1730_v17 = vld [vmem:[%s2693_s3 + $0x10] sm:$0xff] }
 0x234   :  { %v799_v2 = vsel %vm260_vm5, %v2207_v13, %v798_v32  ;;  %v802_v37 = vsel %vm260_vm5, %v798_v32, %v2257_v56  ;;  %v1779_v38 = vpack.c.bf16 %v867_v27, %v825_v35  ;;  %v1123_v35 = vld [vmem:[%s2694_s1] sm:$0xf] }
 0x235   :  { %1776 = vmatpush1.bf16.msra.mxu0 %v1775_v24  ;;  %1790 = vmatprep.subr.bf16.mxu1 %v1789_v44  ;;  %v827_v56 = vmul.f32 %v816_v34, %v799_v2  ;;  %v828_v42 = vmul.f32 %v820_v60, %v802_v37  ;;  %v1132_v37 = vrot.slane %v1123_v35, %v1983_v10 }
 0x236   :  { %1778 = vmatprep.subr.bf16.mxu0 %v1777_v33  ;;  %1792 = vmatpush1.bf16.msra.mxu1 %v1791_v11 }
 0x237   :  { %v840_v39 = vpop.permute.xlu1 %839  ;;  %v876_v40 = vpop.permute.xlu0 %875 }
 0x238   :  { %v841_v29 = vsel %vm304_vm6, %v2211_v15, %v840_v39  ;;  %v844_v13 = vsel %vm304_vm6, %v840_v39, %v2264_v6  ;;  %v885_v47 = vsel %vm348_vm7, %v876_v40, %v878_v30  ;;  %v900_v6 = vrot.slane %v1717_v28, %v1995_v19 }
 0x239   :  { %v869_v43 = vmul.f32 %v858_v36, %v841_v29  ;;  %v870_v45 = vmul.f32 %v862_v62, %v844_v13  ;;  %1780 = vmatpush1.bf16.msra.mxu0 %v1779_v38  ;;  %v909_v51 = vmul.f32 %v892_v46, %v885_v47  ;;  %v1722_v36 = vld [vmem:[%s2694_s1 + $0x4] sm:$0xf] }
 0x23a   :  { %v1174_v38 = vrot.slane %v1722_v36, %v1983_v10  ;;  %v1178_v39 = vrot.slane %v1722_v36, %v1995_v19  ;;  %v1182_v47 = vrot.slane %v1722_v36, %v2003_v23 }
 0x23b   :  { %v1795_v48 = vpack.c.bf16 %v869_v43, %v827_v56  ;;  %v880_v26 = vpop.permute.xlu1 %879  ;;  %v1793_v49 = vpack.c.bf16 %v870_v45, %v828_v42  ;;  %v1140_v56 = vrot.slane %v1123_v35, %v2003_v23  ;;  %v1170_v42 = vrot.slane %v1722_v36, %v1997_v20 }
 0x23c   :  { %v884_v15 = vsel %vm348_vm7, %v878_v30, %v880_v26 }
 0x23d   :  { %v910_v14 = vmul.f32 %v896_v41, %v884_v15  ;;  %1794 = vmatprep.subr.bf16.mxu1 %v1793_v49  ;;  %v1128_v41 = vrot.slane %v1123_v35, %v1997_v20  ;;  %v1136_v49 = vrot.slane %v1123_v35, %v1995_v19  ;;  %v2544_v35 = vld [vmem:[%s2694_s1 + $0x1c] sm:$0xf] }
 0x23e   :  { %1796 = vmatpush1.bf16.msra.mxu1 %v1795_v48 }
 0x23f   :  { %981 = vmatprep.subr.mxu0 %v910_v14  ;;  %v882_v53 = vpop.permute.xlu1 %881 }
 0x240   :  { %v883_v54 = vsel %vm348_vm7, %v880_v26, %v882_v53  ;;  %v886_v1 = vsel %vm348_vm7, %v882_v53, %v876_v40  ;;  %982 = vmatpush1.msra.mxu0 %v909_v51 }
 0x241   :  { %v911_v55 = vmul.f32 %v900_v6, %v883_v54  ;;  %v912_v57 = vmul.f32 %v904_v50, %v886_v1  ;;  %1720 = vmatmul.mubr.msk.f32.vlgmr.msra.gmra.mrb[2].mxu0 %vm427_vm8, %v1718_v52  ;;  %v2516_v54 = vld [vmem:[%s2694_s1 + $0x8] sm:$0xf] }
 0x242   :  { %1563 = vmatprep.mubr.f32.mxu0 %v1854_v4 }
 0x243   :  { %1052 = vmatprep.subr.mxu1 %v912_v57 }
 0x244   :  { %1053 = vmatpush1.msra.mxu1 %v911_v55 }
 0x245   :  { %1721 = vmatmul.mubr.msk.f32.vlgmr.msra.gmra.mrb[2].mxu1 %vm427_vm8, %v1718_v52 }
 0x246   :  { %1634 = vmatprep.mubr.f32.mxu1 %v1854_v4 }
 0x248   :  { %v960_v58 = vpop.permute.xlu0 %959 }
 0x314   :  { %v1031_v31 = vpop.f32.mrb[2].mxu0 }
 0x315   :  { %v1032_v59 = vadd.f32 %v1031_v31, %v960_v58  ;;  %v1033_v61 = vpop.f32.mrb[3].mxu0  ;;  %v2521_v31 = vld [vmem:[%s2694_s1 + $0x14] sm:$0xf] }
 0x316   :  { %v1034_v4 = vadd.f32 %v1033_v61, %v960_v58 }
 0x317   :  { %v2388_v18 = vmax.f32 %v1032_v59, 0.0  ;;  %v1724_v59 = vld [vmem:[%s2694_s1 + $0xc] sm:$0xf] }
 0x318   :  { %v1102_v63 = vpop.f32.mrb[2].mxu1  ;;  %v2418_v8 = vmax.f32 %v1034_v4, 0.0 }
 0x319   :  { %v1103_v0 = vadd.f32 %v1102_v63, %v960_v58  ;;  %1111 = vrot.lane.b32.xlu1 %v2388_v18, %s1848_s24  ;;  %v1104_v3 = vpop.f32.mrb[3].mxu1 }
 0x31a   :  { %v1105_v12 = vadd.f32 %v1104_v3, %v960_v58 }
 0x31b   :  { %v2392_v7 = vmax.f32 %v1103_v0, 0.0  ;;  %v1212_v0 = vrot.slane %v2516_v54, %v1997_v20 }
 0x31c   :  { %v2424_v16 = vmax.f32 %v1105_v12, 0.0 }
 0x31d   :  { %1153 = vrot.lane.b32.xlu1 %v2388_v18, %s1847_s23  ;;  %1157 = vrot.lane.b32.xlu0 %v2392_v7, %s1847_s23 }
 0x321   :  { %1241 = vrot.lane.b32.xlu0 %v2392_v7, %s1850_s8  ;;  %1115 = vrot.lane.b32.xlu1 %v2392_v7, %s1848_s24 }
 0x325   :  { %1287 = vrot.lane.b32.xlu0 %v2392_v7, %s1851_s9  ;;  %1195 = vrot.lane.b32.xlu1 %v2388_v18, %s1849_s7 }
 0x329   :  { %1329 = vrot.lane.b32.xlu0 %v2392_v7, %s1852_s10  ;;  %1237 = vrot.lane.b32.xlu1 %v2388_v18, %s1850_s8 }
 0x32d   :  { %1371 = vrot.lane.b32.xlu0 %v2392_v7, %s1853_s11  ;;  %1199 = vrot.lane.b32.xlu1 %v2392_v7, %s1849_s7 }
 0x331   :  { %1367 = vrot.lane.b32.xlu0 %v2388_v18, %s1853_s11  ;;  %1283 = vrot.lane.b32.xlu1 %v2388_v18, %s1851_s9 }
 0x335   :  { %1113 = vrot.lane.b32.xlu0 %v2418_v8, %s1848_s24  ;;  %1325 = vrot.lane.b32.xlu1 %v2388_v18, %s1852_s10 }
 0x339   :  { %1155 = vrot.lane.b32.xlu0 %v2418_v8, %s1847_s23  ;;  %1117 = vrot.lane.b32.xlu1 %v2424_v16, %s1848_s24 }
 0x33d   :  { %1159 = vrot.lane.b32.xlu0 %v2424_v16, %s1847_s23  ;;  %1201 = vrot.lane.b32.xlu1 %v2424_v16, %s1849_s7 }
 0x341   :  { %1197 = vrot.lane.b32.xlu0 %v2418_v8, %s1849_s7  ;;  %1285 = vrot.lane.b32.xlu1 %v2418_v8, %s1851_s9 }
 0x345   :  { %1239 = vrot.lane.b32.xlu0 %v2418_v8, %s1850_s8  ;;  %1327 = vrot.lane.b32.xlu1 %v2418_v8, %s1852_s10 }
 0x349   :  { %1243 = vrot.lane.b32.xlu0 %v2424_v16, %s1850_s8  ;;  %1369 = vrot.lane.b32.xlu1 %v2418_v8, %s1853_s11 }
 0x34d   :  { %1289 = vrot.lane.b32.xlu0 %v2424_v16, %s1851_s9  ;;  %1331 = vrot.lane.b32.xlu1 %v2424_v16, %s1852_s10 }
 0x351   :  { %1373 = vrot.lane.b32.xlu0 %v2424_v16, %s1853_s11  ;;  %1411 = vrot.lane.b32.xlu1 %v2418_v8, %s1856_s12 }
 0x355   :  { %1413 = vrot.lane.b32.xlu0 %v2392_v7, %s1856_s12  ;;  %1409 = vrot.lane.b32.xlu1 %v2388_v18, %s1856_s12 }
 0x359   :  { %1415 = vrot.lane.b32.xlu0 %v2424_v16, %s1856_s12  ;;  %1493 = vperm.xlu1 %1840, %v1730_v17   ;;  %v2531_v17 = vld [vmem:[%s2694_s1 + $0x18] sm:$0xf] }
 0x38b   :  { %v1112_v21 = vpop.permute.xlu1 %1111 }
 0x38f   :  { %v1158_v22 = vpop.permute.xlu0 %1157  ;;  %v1154_v5 = vpop.permute.xlu1 %1153 }
 0x393   :  { %v2463_v24 = vpop.permute.xlu0 %1241  ;;  %v1116_v25 = vpop.permute.xlu1 %1115 }
 0x397   :  { %v2465_v27 = vpop.permute.xlu0 %1287  ;;  %v2467_v11 = vpop.permute.xlu1 %1195 }
 0x39b   :  { %v2469_v30 = vpop.permute.xlu0 %1329  ;;  %v2471_v32 = vpop.permute.xlu1 %1237 }
 0x39f   :  { %v2473_v44 = vpop.permute.xlu0 %1371  ;;  %v2475_v33 = vpop.permute.xlu1 %1199 }
 0x3a3   :  { %v2477_v34 = vpop.permute.xlu0 %1367  ;;  %v2479_v60 = vpop.permute.xlu1 %1283 }
 0x3a7   :  { %v1114_v62 = vpop.permute.xlu0 %1113  ;;  %v2487_v2 = vpop.permute.xlu1 %1325 }
 0x3a8   :  { %v1121_v28 = vsel %vm37_vm0, %v1112_v21, %v1114_v62  ;;  %v1120_v50 = vsel %vm37_vm0, %v1114_v62, %v1116_v25  ;;  %v1304_v62 = vrot.slane %v2521_v31, %v1983_v10 }
 0x3a9   :  { %v1146_v43 = vmul.f32 %v1132_v37, %v1121_v28  ;;  %v1147_v61 = vmul.f32 %v1136_v49, %v1120_v50  ;;  %v1258_v37 = vrot.slane %v1724_v59, %v1983_v10 }
 0x3ab   :  { %v1156_v40 = vpop.permute.xlu0 %1155  ;;  %v1118_v29 = vpop.permute.xlu1 %1117 }
 0x3ac   :  { %v1163_v13 = vsel %vm80_vm1, %v1154_v5, %v1156_v40  ;;  %v1162_v45 = vsel %vm80_vm1, %v1156_v40, %v1158_v22  ;;  %v1119_v48 = vsel %vm37_vm0, %v1116_v25, %v1118_v29  ;;  %v1122_v26 = vsel %vm37_vm0, %v1118_v29, %v1112_v21 }
 0x3ad   :  { %v1188_v46 = vmul.f32 %v1174_v38, %v1163_v13  ;;  %v1189_v51 = vmul.f32 %v1178_v39, %v1162_v45  ;;  %v1145_v1 = vmul.f32 %v1128_v41, %v1122_v26  ;;  %v1148_v55 = vmul.f32 %v1140_v56, %v1119_v48 }
 0x3ae   :  { %v1224_v21 = vrot.slane %v2516_v54, %v2003_v23  ;;  %v1300_v25 = vrot.slane %v2521_v31, %v1997_v20  ;;  %v1262_v38 = vrot.slane %v1724_v59, %v1995_v19  ;;  %v1342_v39 = vrot.slane %v2531_v17, %v1997_v20 }
 0x3af   :  { %v1160_v15 = vpop.permute.xlu0 %1159  ;;  %v1202_v14 = vpop.permute.xlu1 %1201  ;;  %v1797_v6 = vpack.c.bf16 %v1188_v46, %v1146_v43  ;;  %v1815_v36 = vpack.c.bf16 %v1189_v51, %v1147_v61  ;;  %v1346_v40 = vrot.slane %v2531_v17, %v1983_v10  ;;  %v1254_v29 = vrot.slane %v1724_v59, %v1997_v20 }
 0x3b0   :  { %v1161_v52 = vsel %vm80_vm1, %v1158_v22, %v1160_v15  ;;  %v1164_v53 = vsel %vm80_vm1, %v1160_v15, %v1154_v5  ;;  %v1216_v22 = vrot.slane %v2516_v54, %v1983_v10  ;;  %v1220_v5 = vrot.slane %v2516_v54, %v1995_v19 }
 0x3b1   :  { %v1187_v57 = vmul.f32 %v1170_v42, %v1164_v53  ;;  %v1190_v58 = vmul.f32 %v1182_v47, %v1161_v52  ;;  %1798 = vmatprep.subr.bf16.mxu0 %v1797_v6  ;;  %v1266_v42 = vrot.slane %v1724_v59, %v2003_v23  ;;  %v1384_v43 = vrot.slane %v2544_v35, %v1997_v20 }
 0x3b2   :  { %v1388_v45 = vrot.slane %v2544_v35, %v1983_v10  ;;  %v1308_v47 = vrot.slane %v2521_v31, %v1995_v19  ;;  %v1312_v48 = vrot.slane %v2521_v31, %v2003_v23  ;;  %v1350_v26 = vrot.slane %v2531_v17, %v1995_v19  ;;  %v2599_v31 = vld [vmem:[%s2694_s1 + $0x20] sm:$0xf] }
 0x3b3   :  { %v1799_v63 = vpack.c.bf16 %v1187_v57, %v1145_v1  ;;  %v1198_v3 = vpop.permute.xlu0 %1197  ;;  %v1286_v4 = vpop.permute.xlu1 %1285  ;;  %v1813_v12 = vpack.c.bf16 %v1190_v58, %v1148_v55  ;;  %v1203_v49 = vsel %vm124_vm2, %v2475_v33, %v1202_v14  ;;  %v1206_v15 = vsel %vm124_vm2, %v1202_v14, %v2467_v11 }
 0x3b4   :  { %v1205_v28 = vsel %vm124_vm2, %v2467_v11, %v1198_v3  ;;  %v1292_v13 = vsel %vm216_vm4, %v1286_v4, %v2465_v27  ;;  %v1354_v53 = vrot.slane %v2531_v17, %v2003_v23  ;;  %v1392_v54 = vrot.slane %v2544_v35, %v1995_v19 }
 0x3b5   :  { %1800 = vmatpush1.bf16.msra.mxu0 %v1799_v63  ;;  %1814 = vmatprep.subr.bf16.mxu1 %v1813_v12  ;;  %v1230_v6 = vmul.f32 %v1216_v22, %v1205_v28  ;;  %v1318_v51 = vmul.f32 %v1304_v62, %v1292_v13  ;;  %v1204_v1 = vsel %vm124_vm2, %v1198_v3, %v2475_v33 }
 0x3b6   :  { %1816 = vmatpush1.bf16.msra.mxu1 %v1815_v36  ;;  %v1293_v11 = vsel %vm216_vm4, %v2479_v60, %v1286_v4  ;;  %v1396_v58 = vrot.slane %v2544_v35, %v2003_v23  ;;  %v1229_v59 = vmul.f32 %v1212_v0, %v1206_v15  ;;  %v1232_v61 = vmul.f32 %v1224_v21, %v1203_v49 }
 0x3b7   :  { %v1240_v41 = vpop.permute.xlu0 %1239  ;;  %v1328_v56 = vpop.permute.xlu1 %1327  ;;  %v1231_v22 = vmul.f32 %v1220_v5, %v1204_v1  ;;  %v1317_v35 = vmul.f32 %v1300_v25, %v1293_v11  ;;  %v1805_v0 = vpack.c.bf16 %v1318_v51, %v2418_v8  ;;  %v1430_v21 = vrot.slane %v2599_v31, %v1983_v10  ;;  %v1729_v11 = vld [vmem:[%s2695_s2 + $0x10] sm:$0xff] }
 0x3b8   :  { %v1247_v46 = vsel %vm168_vm3, %v2471_v32, %v1240_v41  ;;  %v1246_v52 = vsel %vm168_vm3, %v1240_v41, %v2463_v24 }
 0x3b9   :  { %v1272_v50 = vmul.f32 %v1258_v37, %v1247_v46  ;;  %v1273_v3 = vmul.f32 %v1262_v38, %v1246_v52 }
 0x3bb   :  { %v1244_v14 = vpop.permute.xlu0 %1243  ;;  %v1370_v55 = vpop.permute.xlu1 %1369  ;;  %v1801_v57 = vpack.c.bf16 %v1272_v50, %v1230_v6  ;;  %v1819_v28 = vpack.c.bf16 %v1273_v3, %v1231_v22 }
 0x3bc   :  { %v1245_v33 = vsel %vm168_vm3, %v2463_v24, %v1244_v14  ;;  %v1248_v63 = vsel %vm168_vm3, %v1244_v14, %v2471_v32  ;;  %v1376_v17 = vsel %vm304_vm6, %v1370_v55, %v2473_v44  ;;  %v1334_v24 = vsel %vm260_vm5, %v1328_v56, %v2469_v30 }
 0x3bd   :  { %v1271_v4 = vmul.f32 %v1254_v29, %v1248_v63  ;;  %v1274_v12 = vmul.f32 %v1266_v42, %v1245_v33  ;;  %1802 = vmatprep.subr.bf16.mxu0 %v1801_v57  ;;  %v1335_v32 = vsel %vm260_vm5, %v2487_v2, %v1328_v56  ;;  %v1377_v5 = vsel %vm304_vm6, %v2477_v34, %v1370_v55 }
 0x3be   :  { %v1402_v8 = vmul.f32 %v1388_v45, %v1376_v17  ;;  %v1807_v56 = vpack.c.bf16 %v1317_v35, %v2388_v18  ;;  %v1360_v42 = vmul.f32 %v1346_v40, %v1334_v24  ;;  %v1401_v46 = vmul.f32 %v1384_v43, %v1377_v5 }
 0x3bf   :  { %v1803_v36 = vpack.c.bf16 %v1271_v4, %v1229_v59  ;;  %v1290_v62 = vpop.permute.xlu0 %1289  ;;  %v1332_v37 = vpop.permute.xlu1 %1331  ;;  %v1817_v38 = vpack.c.bf16 %v1274_v12, %v1232_v61 }
 0x3c0   :  { %v1291_v10 = vsel %vm216_vm4, %v2465_v27, %v1290_v62  ;;  %v1294_v25 = vsel %vm216_vm4, %v1290_v62, %v2479_v60  ;;  %v1333_v41 = vsel %vm260_vm5, %v2469_v30, %v1332_v37  ;;  %v1336_v45 = vsel %vm260_vm5, %v1332_v37, %v2487_v2 }
 0x3c1   :  { %v1319_v29 = vmul.f32 %v1308_v47, %v1291_v10  ;;  %v1320_v13 = vmul.f32 %v1312_v48, %v1294_v25  ;;  %1804 = vmatpush1.bf16.msra.mxu0 %v1803_v36  ;;  %1818 = vmatprep.subr.bf16.mxu1 %v1817_v38  ;;  %v1359_v27 = vmul.f32 %v1342_v39, %v1335_v32 }
 0x3c2   :  { %1806 = vmatprep.subr.bf16.mxu0 %v1805_v0  ;;  %1820 = vmatpush1.bf16.msra.mxu1 %v1819_v28  ;;  %v1361_v30 = vmul.f32 %v1350_v26, %v1333_v41  ;;  %v1809_v40 = vpack.c.bf16 %v1402_v8, %v1360_v42  ;;  %v1362_v15 = vmul.f32 %v1354_v53, %v1336_v45  ;;  %v1665_v42 = vld [vmem:[%s2697_s5] sm:$0xff] }
 0x3c3   :  { %v1823_v60 = vpack.c.bf16 %v1319_v29, %v2392_v7  ;;  %v1374_v47 = vpop.permute.xlu0 %1373  ;;  %v1412_v48 = vpop.permute.xlu1 %1411  ;;  %v1821_v49 = vpack.c.bf16 %v1320_v13, %v2424_v16  ;;  %v1811_v7 = vpack.c.bf16 %v1401_v46, %v1359_v27  ;;  %v1426_v26 = vrot.slane %v2599_v31, %v1997_v20  ;;  %v1661_v13 = vld [vmem:[%s2696_s4] sm:$0xff] }
 0x3c4   :  { %v1375_v18 = vsel %vm304_vm6, %v2473_v44, %v1374_v47  ;;  %v1378_v2 = vsel %vm304_vm6, %v1374_v47, %v2477_v34  ;;  %v1434_v53 = vrot.slane %v2599_v31, %v1995_v19 }
 0x3c5   :  { %v1403_v39 = vmul.f32 %v1392_v54, %v1375_v18  ;;  %v1404_v43 = vmul.f32 %v1396_v58, %v1378_v2  ;;  %1808 = vmatpush1.bf16.msra.mxu0 %v1807_v56  ;;  %1822 = vmatprep.subr.bf16.mxu1 %v1821_v49  ;;  %v1438_v54 = vrot.slane %v2599_v31, %v2003_v23 }
 0x3c6   :  { %1810 = vmatprep.subr.bf16.mxu0 %v1809_v40  ;;  %1824 = vmatpush1.bf16.msra.mxu1 %v1823_v60 }
 0x3c7   :  { %v1827_v6 = vpack.c.bf16 %v1403_v39, %v1361_v30  ;;  %v1414_v16 = vpop.permute.xlu0 %1413  ;;  %v1410_v50 = vpop.permute.xlu1 %1409  ;;  %v1825_v44 = vpack.c.bf16 %v1404_v43, %v1362_v15  ;;  %v1843_v39 = vld [vmem:[%s2692_s0] sm:$0xff] }
 0x3c8   :  { %v1418_v51 = vsel %vm348_vm7, %v1412_v48, %v1414_v16  ;;  %v1419_v34 = vsel %vm348_vm7, %v1410_v50, %v1412_v48 }
 0x3c9   :  { %v1444_v52 = vmul.f32 %v1430_v21, %v1418_v51  ;;  %1812 = vmatpush1.bf16.msra.mxu0 %v1811_v7  ;;  %1826 = vmatprep.subr.bf16.mxu1 %v1825_v44  ;;  %v1443_v1 = vmul.f32 %v1426_v26, %v1419_v34  ;;  %v1844_v7 = vld [vmem:[%s2692_s0 + $0x8] sm:$0xff] }
 0x3ca   :  { %1828 = vmatpush1.bf16.msra.mxu1 %v1827_v6 }
 0x3cb   :  { %v1416_v20 = vpop.permute.xlu0 %1415  ;;  %1515 = vmatprep.subr.mxu0 %v1444_v52 }
 0x3cc   :  { %v1417_v14 = vsel %vm348_vm7, %v1414_v16, %v1416_v20  ;;  %v1420_v55 = vsel %vm348_vm7, %v1416_v20, %v1410_v50  ;;  %v1845_v16 = vld [vmem:[%s2692_s0 + $0x10] sm:$0xff]  ;;  %v1846_v50 = vld [vmem:[%s2692_s0 + $0x18] sm:$0xff] }
 0x3cd   :  { %v1445_v57 = vmul.f32 %v1434_v53, %v1417_v14  ;;  %v1446_v58 = vmul.f32 %v1438_v54, %v1420_v55  ;;  %1516 = vmatpush1.msra.mxu0 %v1443_v1 }
 0x3ce   :  { %1731 = vmatmul.mubr.msk.f32.vlgmr.msra.gmra.mrb[4].mxu0 %vm427_vm8, %v1729_v11 }
 0x3cf   :  { %1586 = vmatprep.subr.mxu1 %v1446_v58 }
 0x3d0   :  { %1587 = vmatpush1.msra.mxu1 %v1445_v57 }
 0x3d1   :  { %1732 = vmatmul.mubr.msk.f32.vlgmr.msra.gmra.mrb[4].mxu1 %vm427_vm8, %v1729_v11 }
 0x3d8   :  { %v1494_v19 = vpop.permute.xlu1 %1493 }
 0x4a1   :  { %v1565_v23 = vpop.f32.mrb[4].mxu0 }
 0x4a2   :  { %v1566_v31 = vadd.f32 %v1565_v23, %v1494_v19  ;;  %v1567_v59 = vpop.f32.mrb[5].mxu0 }
 0x4a3   :  { %v1568_v61 = vadd.f32 %v1567_v59, %v1494_v19 }
 0x4a4   :  { %v1636_v33 = vpop.f32.mrb[4].mxu1 }
 0x4a5   :  { %v1641_v63 = vadd.f32 %v1568_v61, %v1566_v31  ;;  %v1637_v3 = vadd.f32 %v1636_v33, %v1494_v19  ;;  %v1638_v4 = vpop.f32.mrb[5].mxu1 }
 0x4a6   :  { %v1639_v9 = vadd.f32 %v1638_v4, %v1494_v19 }
 0x4a7   :  { %v1642_v12 = vadd.f32 %v1641_v63, %v1637_v3 }
 0x4a9   :  { %v1643_v17 = vadd.f32 %v1642_v12, %v1639_v9 }
 0x4ab   :  { %1644 = vadd.xlane.f32.xlu0 %v1643_v17 }
 0x538   :  { %v1645_v22 = vpop.xlane.xlu0 %1644 }
 0x539   :  { %v1646_v35 = vmul.f32 0.001953125, %v1645_v22 }
 0x53b   :  { %v1647_v0 = vsub.f32 %v1566_v31, %v1646_v35  ;;  %v1648_v21 = vsub.f32 %v1568_v61, %v1646_v35  ;;  %v1649_v24 = vsub.f32 %v1637_v3, %v1646_v35  ;;  %v1650_v32 = vsub.f32 %v1639_v9, %v1646_v35 }
 0x53d   :  { %v1651_v36 = vmul.f32 %v1647_v0, %v1647_v0  ;;  %v1652_v62 = vmul.f32 %v1648_v21, %v1648_v21  ;;  %v1653_v37 = vmul.f32 %v1649_v24, %v1649_v24  ;;  %v1654_v5 = vmul.f32 %v1650_v32, %v1650_v32 }
 0x53f   :  { %v1655_v38 = vadd.f32 %v1652_v62, %v1651_v36 }
 0x541   :  { %v1656_v8 = vadd.f32 %v1655_v38, %v1653_v37 }
 0x543   :  { %v1657_v10 = vadd.f32 %v1656_v8, %v1654_v5 }
 0x545   :  { %1658 = vadd.xlane.f32.xlu1 %v1657_v10 }
 0x5d2   :  { %v1659_v25 = vpop.xlane.xlu1 %1658 }
 0x5d3   :  { %v1660_v28 = vmul.f32 0.001953125, %v1659_v25 }
 0x5d5   :  { %v1662_v29 = vadd.f32 1e-05, %v1660_v28 }
 0x5d7   :  { %1841 = vrsqrt.f32 %v1662_v29 }
 0x5e1   :  { %v1842_v41 = vpop.eup %1841 }
 0x5e2   :  { %v1664_v56 = vmul.f32 %v1842_v41, %v1661_v13 }
 0x5e4   :  { %1670 = vperm.xlu0 %1839, %v1664_v56   ;;  %v1666_v45 = vmul.f32 %v1664_v56, %v1646_v35 }
 0x5e6   :  { %v1667_v27 = vsub.f32 %v1665_v42, %v1666_v45 }
 0x5e8   :  { %1679 = vperm.xlu1 %1840, %v1667_v27  }
 0x663   :  { %v1671_v46 = vpop.permute.xlu0 %1670 }
 0x664   :  { %v1673_v60 = vmul.f32 %v1671_v46, %v1566_v31  ;;  %v1674_v47 = vmul.f32 %v1671_v46, %v1568_v61  ;;  %v1675_v48 = vmul.f32 %v1671_v46, %v1637_v3  ;;  %v1676_v49 = vmul.f32 %v1671_v46, %v1639_v9 }
 0x667   :  { %v1680_v30 = vpop.permute.xlu1 %1679 }
 0x668   :  { %v1682_v18 = vadd.f32 %v1680_v30, %v1673_v60  ;;  %v1683_v2 = vadd.f32 %v1680_v30, %v1674_v47  ;;  %v1684_v40 = vadd.f32 %v1680_v30, %v1675_v48  ;;  %v1685_v15 = vadd.f32 %v1680_v30, %v1676_v49 }
 0x66a   :  { %v1686_v43 = vadd.f32 %v1843_v39, %v1682_v18  ;;  %v1687_v6 = vadd.f32 %v1844_v7, %v1683_v2  ;;  %v1688_v26 = vadd.f32 %v1845_v16, %v1684_v40  ;;  %v1689_v44 = vadd.f32 %v1846_v50, %v1685_v15 }
 0x66c   :  { %v1690_v51 = vmax.f32 %v1686_v43, 0.0  ;;  %v1691_v34 = vmax.f32 %v1687_v6, 0.0  ;;  %v1692_v52 = vmax.f32 %v1688_v26, 0.0  ;;  %v1693_v53 = vmax.f32 %v1689_v44, 0.0 }
 0x66e   :  { %1694 = vst [vmem:[%s2698_s6] sm:$0xff] %v1690_v51  ;;  %1695 = vst [vmem:[%s2698_s6 + $0x8] sm:$0xff] %v1691_v34 }
 0x66f   :  { %1696 = vst [vmem:[%s2698_s6 + $0x10] sm:$0xff] %v1692_v52  ;;  %1697 = vst [vmem:[%s2698_s6 + $0x18] sm:$0xff] %v1693_v53 }

</bundles_post_ra>
